<compile_context>
chip_gen: v6e
topology: v6e:2x2x1
jax: 0.10.0
libtpu: 0.0.40
codegen_flags: <defaults>
</compile_context>

<pallas_src>
import functools

import jax
import jax.numpy as jnp
import numpy as np
from jax.experimental import pallas as pl
from jax.experimental.pallas import tpu as pltpu  # noqa: F401  (kept for TPU-specific params if needed)


# ----------------------------- fused kernel -----------------------------

def _mha_fused_kernel(x_ref, wqkv_ref, bqkv_ref, wprojh_ref, bproj_ref, o_ref,
                      *, batch, seq, num_heads, inv_scaling):
    """Whole problem in one invocation; all refs are full-array VMEM tiles.

    x_ref:      (B*N, E)   f32
    wqkv_ref:   (E, 3E)    bf16, pre-permuted+transposed: columns ordered (qkv, h, d)
    bqkv_ref:   (1, 3E)    bf16, pre-permuted
    wprojh_ref: (H, D, E)  bf16, projection weight (in,out) split per head
    bproj_ref:  (1, E)     bf16
    o_ref:      (B*N, E)   f32
    """
    BN, E = x_ref.shape
    B, N, H = batch, seq, num_heads
    D = E // H
    f32 = jnp.float32

    # --- QKV projection: ONE (B*N, E) @ (E, 3E) MXU matmul (bf16 operands, f32 acc) ---
    x = x_ref[...].astype(jnp.bfloat16)
    qkv = jnp.dot(x, wqkv_ref[...], preferred_element_type=f32)
    qkv = qkv + bqkv_ref[...].astype(f32)              # (B*N, 3E) f32; cols ordered (qkv, h, d)

    # --- split heads: (B*N, E) -> (H*B, N, D); lane slices + leading-dim stacks only ---
    def split_heads(t):
        pieces = [t[:, h * D:(h + 1) * D].reshape(B, N, D) for h in range(H)]
        return jnp.stack(pieces, axis=0).reshape(H * B, N, D).astype(jnp.bfloat16)

    q = split_heads(qkv[:, :E])
    k = split_heads(qkv[:, E:2 * E])
    v = split_heads(qkv[:, 2 * E:])

    # --- attention, batched over (head, batch): one dot for energy, one softmax, one dot for out ---
    energy = jnp.einsum('bqd,bkd->bqk', q, k, preferred_element_type=f32)    # (H*B, N, N)
    # TODO(synk): mask path (energy.mask_fill(~mask, min)) not implemented; module default mask=None.
    m = jnp.max(energy, axis=-1, keepdims=True)
    p = jnp.exp(energy - m)                                                  # f32 (VPU/EUP)
    denom = jnp.sum(p, axis=-1, keepdims=True)
    # softmax THEN divide by sqrt(E) — faithful to the torch module (dropout p=0 -> identity).
    att = p * (pl.reciprocal(denom, approx=True) * inv_scaling)

    out = jnp.einsum('bqk,bkd->bqd', att.astype(jnp.bfloat16), v,
                     preferred_element_type=f32)                             # (H*B, N, D)

    # --- head-merge fused into output projection:
    #     proj[m, e] = sum_h sum_d out[h, m, d] * Wproj[(h*D + d), e]
    #     one head-batched dot + sum over the head axis (no lane-dim relayout needed) ---
    out_h = out.reshape(H, B, N, D).reshape(H, B * N, D).astype(jnp.bfloat16)
    per_head = jnp.einsum('hmd,hde->hme', out_h, wprojh_ref[...],
                          preferred_element_type=f32)                        # (H, B*N, E)
    proj = jnp.sum(per_head, axis=0)                                         # (B*N, E)

    o_ref[...] = (proj + bproj_ref[...].astype(f32)).astype(o_ref.dtype)


# ----------------------------- wrappers -----------------------------

def prepare_params(params, emb_size, num_heads):
    """One-time weight prep (plain JAX, outside the kernel).

    * Re-orders QKV output features from the module's (h, d, qkv) column order to
      (qkv, h, d), so q/k/v are contiguous slices of the linear output.
    * Pre-transposes weights to (in, out), splits the projection weight per head,
      and stores everything in bf16 (MXU-native; halves resident-weight DMA).
    """
    E, H = emb_size, num_heads
    D = E // H
    w_qkv = params["w_qkv"]                  # (3E, E) PyTorch (out, in); out ordered (h, d, qkv)
    b_qkv = params["b_qkv"]                  # (3E,)
    w_qkv_p = w_qkv.reshape(H, D, 3, E).transpose(2, 0, 1, 3).reshape(3 * E, E)
    b_qkv_p = b_qkv.reshape(H, D, 3).transpose(2, 0, 1).reshape(3 * E)
    wproj_t = params["w_proj"].T             # (E, E) = (in, out); in-features ordered (h, d)
    return {
        "wqkv_t": jnp.asarray(w_qkv_p.T, dtype=jnp.bfloat16),                  # (E, 3E)
        "bqkv": jnp.asarray(b_qkv_p, dtype=jnp.bfloat16).reshape(1, 3 * E),    # (1, 3E)
        "wprojh": jnp.asarray(wproj_t, dtype=jnp.bfloat16).reshape(H, D, E),   # (H, D, E)
        "bproj": jnp.asarray(params["b_proj"], dtype=jnp.bfloat16).reshape(1, E),
    }


def multi_head_attention(x, prepped, emb_size, num_heads):
    """x: (B, N, E) f32; prepped: output of prepare_params -> (B, N, E)."""
    B, N, E = x.shape
    assert E == emb_size and E % num_heads == 0
    inv_scaling = 1.0 / (float(emb_size) ** 0.5)

    # Fold batch into rows (free reshape outside the kernel): single kernel invocation,
    # one QKV matmul over all rows, one lane-dense (B*N, E) output slab.
    x_flat = x.reshape(B * N, E)

    kern = functools.partial(_mha_fused_kernel, batch=B, seq=N,
                             num_heads=num_heads, inv_scaling=inv_scaling)

    out_flat = pl.pallas_call(
        kern,
        out_shape=jax.ShapeDtypeStruct((B * N, E), x.dtype),
        # No grid: whole (tiny) working set lives in VMEM for a single step; weights
        # are fetched once. (Production-size flash rewrite would reintroduce a grid.)
    )(x_flat, prepped["wqkv_t"], prepped["bqkv"], prepped["wprojh"], prepped["bproj"])

    return out_flat.reshape(B, N, E)


def multi_head_attention_ref(x, params, emb_size, num_heads):
    """Pure-JAX f32 reference (original weight layout, same math, no Pallas)."""
    B, N, E = x.shape
    D = E // num_heads
    qkv = x @ params["w_qkv"].T + params["b_qkv"]
    qkv = qkv.reshape(B, N, num_heads, D, 3)
    qkv = jnp.transpose(qkv, (4, 0, 2, 1, 3))
    q, k, v = qkv[0], qkv[1], qkv[2]
    energy = jnp.einsum("bhqd,bhkd->bhqk", q, k)
    att = jax.nn.softmax(energy, axis=-1) / (float(emb_size) ** 0.5)
    out = jnp.einsum("bhal,bhlv->bhav", att, v)
    out = jnp.transpose(out, (0, 2, 1, 3)).reshape(B, N, E)
    return out @ params["w_proj"].T + params["b_proj"]


# --------------------------------- main ------------------------------------

if __name__ == "__main__":
    emb_size, num_heads = 64, 8
    B, N = 2, 16

    key = jax.random.PRNGKey(0)
    kx, k1, k2, k3, k4 = jax.random.split(key, 5)

    x = jax.random.normal(kx, (B, N, emb_size), dtype=jnp.float32)
    params = {
        # PyTorch nn.Linear weight layout: (out_features, in_features)
        "w_qkv": 0.05 * jax.random.normal(k1, (3 * emb_size, emb_size), jnp.float32),
        "b_qkv": 0.05 * jax.random.normal(k2, (3 * emb_size,), jnp.float32),
        "w_proj": 0.05 * jax.random.normal(k3, (emb_size, emb_size), jnp.float32),
        "b_proj": 0.05 * jax.random.normal(k4, (emb_size,), jnp.float32),
    }

    prepped = prepare_params(params, emb_size, num_heads)   # one-time weight prep (bf16)
    out = multi_head_attention(x, prepped, emb_size, num_heads)
    out = jax.block_until_ready(out)

    ref = jax.block_until_ready(
        multi_head_attention_ref(x, params, emb_size, num_heads))
    # bf16 MXU operands + approx reciprocal: error ~1e-3 abs, well inside 1e-2.
    np.testing.assert_allclose(np.asarray(out), np.asarray(ref),
                               rtol=1e-2, atol=1e-2)

    print("KERNEL_OK")
</pallas_src>

<mosaic_0001>
module attributes {stable_mosaic.version = 11 : i64} {
  func.func @_mha_fused_kernel(%arg0: memref<32x64xf32, #tpu.memory_space<vmem>>, %arg1: memref<64x192xbf16, #tpu.memory_space<vmem>>, %arg2: memref<1x192xbf16, #tpu.memory_space<vmem>>, %arg3: memref<8x8x64xbf16, #tpu.memory_space<vmem>>, %arg4: memref<1x64xbf16, #tpu.memory_space<vmem>>, %arg5: memref<32x64xf32, #tpu.memory_space<vmem>>) attributes {dimension_semantics = [], scalar_prefetch = 0 : i64, scratch_operands = 0 : i64, tpu.core_type = #tpu.core_type<tc>} {
    %c0 = arith.constant 0 : index
    %c0_0 = arith.constant 0 : index
    %0 = vector.load %arg0[%c0, %c0_0] : memref<32x64xf32, #tpu.memory_space<vmem>>, vector<32x64xf32>
    %1 = arith.truncf %0 : vector<32x64xf32> to vector<32x64xbf16>
    %c0_1 = arith.constant 0 : index
    %c0_2 = arith.constant 0 : index
    %2 = vector.load %arg1[%c0_1, %c0_2] : memref<64x192xbf16, #tpu.memory_space<vmem>>, vector<64x192xbf16>
    %cst = arith.constant dense<0.000000e+00> : vector<32x192xf32>
    %3 = tpu.matmul %1, %2, %cst {dimension_numbers = #tpu.dot_dimension_numbers<[1], [0], [0], [1], [0, 0, 1, 1], [], []>} : vector<32x64xbf16>, vector<64x192xbf16>, vector<32x192xf32> -> vector<32x192xf32>
    %c0_3 = arith.constant 0 : index
    %c0_4 = arith.constant 0 : index
    %4 = vector.load %arg2[%c0_3, %c0_4] : memref<1x192xbf16, #tpu.memory_space<vmem>>, vector<1x192xbf16>
    %5 = arith.extf %4 : vector<1x192xbf16> to vector<1x192xf32>
    %6 = vector.broadcast %5 : vector<1x192xf32> to vector<32x192xf32>
    %7 = arith.addf %3, %6 : vector<32x192xf32>
    %8 = vector.extract_strided_slice %7 {offsets = [0, 0], sizes = [32, 64], strides = [1, 1]} : vector<32x192xf32> to vector<32x64xf32>
    %9 = vector.extract_strided_slice %8 {offsets = [0, 0], sizes = [32, 8], strides = [1, 1]} : vector<32x64xf32> to vector<32x8xf32>
    %10 = vector.shape_cast %9 : vector<32x8xf32> to vector<2x16x8xf32>
    %11 = vector.extract_strided_slice %8 {offsets = [0, 8], sizes = [32, 8], strides = [1, 1]} : vector<32x64xf32> to vector<32x8xf32>
    %12 = vector.shape_cast %11 : vector<32x8xf32> to vector<2x16x8xf32>
    %13 = vector.extract_strided_slice %8 {offsets = [0, 16], sizes = [32, 8], strides = [1, 1]} : vector<32x64xf32> to vector<32x8xf32>
    %14 = vector.shape_cast %13 : vector<32x8xf32> to vector<2x16x8xf32>
    %15 = vector.extract_strided_slice %8 {offsets = [0, 24], sizes = [32, 8], strides = [1, 1]} : vector<32x64xf32> to vector<32x8xf32>
    %16 = vector.shape_cast %15 : vector<32x8xf32> to vector<2x16x8xf32>
    %17 = vector.extract_strided_slice %8 {offsets = [0, 32], sizes = [32, 8], strides = [1, 1]} : vector<32x64xf32> to vector<32x8xf32>
    %18 = vector.shape_cast %17 : vector<32x8xf32> to vector<2x16x8xf32>
    %19 = vector.extract_strided_slice %8 {offsets = [0, 40], sizes = [32, 8], strides = [1, 1]} : vector<32x64xf32> to vector<32x8xf32>
    %20 = vector.shape_cast %19 : vector<32x8xf32> to vector<2x16x8xf32>
    %21 = vector.extract_strided_slice %8 {offsets = [0, 48], sizes = [32, 8], strides = [1, 1]} : vector<32x64xf32> to vector<32x8xf32>
    %22 = vector.shape_cast %21 : vector<32x8xf32> to vector<2x16x8xf32>
    %23 = vector.extract_strided_slice %8 {offsets = [0, 56], sizes = [32, 8], strides = [1, 1]} : vector<32x64xf32> to vector<32x8xf32>
    %24 = vector.shape_cast %23 : vector<32x8xf32> to vector<2x16x8xf32>
    %25 = vector.shape_cast %10 : vector<2x16x8xf32> to vector<1x2x16x8xf32>
    %26 = vector.shape_cast %12 : vector<2x16x8xf32> to vector<1x2x16x8xf32>
    %27 = vector.shape_cast %14 : vector<2x16x8xf32> to vector<1x2x16x8xf32>
    %28 = vector.shape_cast %16 : vector<2x16x8xf32> to vector<1x2x16x8xf32>
    %29 = vector.shape_cast %18 : vector<2x16x8xf32> to vector<1x2x16x8xf32>
    %30 = vector.shape_cast %20 : vector<2x16x8xf32> to vector<1x2x16x8xf32>
    %31 = vector.shape_cast %22 : vector<2x16x8xf32> to vector<1x2x16x8xf32>
    %32 = vector.shape_cast %24 : vector<2x16x8xf32> to vector<1x2x16x8xf32>
    %33 = tpu.concatenate %25, %26, %27, %28, %29, %30, %31, %32 in 0 : vector<1x2x16x8xf32>, vector<1x2x16x8xf32>, vector<1x2x16x8xf32>, vector<1x2x16x8xf32>, vector<1x2x16x8xf32>, vector<1x2x16x8xf32>, vector<1x2x16x8xf32>, vector<1x2x16x8xf32> -> vector<8x2x16x8xf32>
    %34 = vector.shape_cast %33 : vector<8x2x16x8xf32> to vector<16x16x8xf32>
    %35 = arith.truncf %34 : vector<16x16x8xf32> to vector<16x16x8xbf16>
    %36 = vector.extract_strided_slice %7 {offsets = [0, 64], sizes = [32, 64], strides = [1, 1]} : vector<32x192xf32> to vector<32x64xf32>
    %37 = vector.extract_strided_slice %36 {offsets = [0, 0], sizes = [32, 8], strides = [1, 1]} : vector<32x64xf32> to vector<32x8xf32>
    %38 = vector.shape_cast %37 : vector<32x8xf32> to vector<2x16x8xf32>
    %39 = vector.extract_strided_slice %36 {offsets = [0, 8], sizes = [32, 8], strides = [1, 1]} : vector<32x64xf32> to vector<32x8xf32>
    %40 = vector.shape_cast %39 : vector<32x8xf32> to vector<2x16x8xf32>
    %41 = vector.extract_strided_slice %36 {offsets = [0, 16], sizes = [32, 8], strides = [1, 1]} : vector<32x64xf32> to vector<32x8xf32>
    %42 = vector.shape_cast %41 : vector<32x8xf32> to vector<2x16x8xf32>
    %43 = vector.extract_strided_slice %36 {offsets = [0, 24], sizes = [32, 8], strides = [1, 1]} : vector<32x64xf32> to vector<32x8xf32>
    %44 = vector.shape_cast %43 : vector<32x8xf32> to vector<2x16x8xf32>
    %45 = vector.extract_strided_slice %36 {offsets = [0, 32], sizes = [32, 8], strides = [1, 1]} : vector<32x64xf32> to vector<32x8xf32>
    %46 = vector.shape_cast %45 : vector<32x8xf32> to vector<2x16x8xf32>
    %47 = vector.extract_strided_slice %36 {offsets = [0, 40], sizes = [32, 8], strides = [1, 1]} : vector<32x64xf32> to vector<32x8xf32>
    %48 = vector.shape_cast %47 : vector<32x8xf32> to vector<2x16x8xf32>
    %49 = vector.extract_strided_slice %36 {offsets = [0, 48], sizes = [32, 8], strides = [1, 1]} : vector<32x64xf32> to vector<32x8xf32>
    %50 = vector.shape_cast %49 : vector<32x8xf32> to vector<2x16x8xf32>
    %51 = vector.extract_strided_slice %36 {offsets = [0, 56], sizes = [32, 8], strides = [1, 1]} : vector<32x64xf32> to vector<32x8xf32>
    %52 = vector.shape_cast %51 : vector<32x8xf32> to vector<2x16x8xf32>
    %53 = vector.shape_cast %38 : vector<2x16x8xf32> to vector<1x2x16x8xf32>
    %54 = vector.shape_cast %40 : vector<2x16x8xf32> to vector<1x2x16x8xf32>
    %55 = vector.shape_cast %42 : vector<2x16x8xf32> to vector<1x2x16x8xf32>
    %56 = vector.shape_cast %44 : vector<2x16x8xf32> to vector<1x2x16x8xf32>
    %57 = vector.shape_cast %46 : vector<2x16x8xf32> to vector<1x2x16x8xf32>
    %58 = vector.shape_cast %48 : vector<2x16x8xf32> to vector<1x2x16x8xf32>
    %59 = vector.shape_cast %50 : vector<2x16x8xf32> to vector<1x2x16x8xf32>
    %60 = vector.shape_cast %52 : vector<2x16x8xf32> to vector<1x2x16x8xf32>
    %61 = tpu.concatenate %53, %54, %55, %56, %57, %58, %59, %60 in 0 : vector<1x2x16x8xf32>, vector<1x2x16x8xf32>, vector<1x2x16x8xf32>, vector<1x2x16x8xf32>, vector<1x2x16x8xf32>, vector<1x2x16x8xf32>, vector<1x2x16x8xf32>, vector<1x2x16x8xf32> -> vector<8x2x16x8xf32>
    %62 = vector.shape_cast %61 : vector<8x2x16x8xf32> to vector<16x16x8xf32>
    %63 = arith.truncf %62 : vector<16x16x8xf32> to vector<16x16x8xbf16>
    %64 = vector.extract_strided_slice %7 {offsets = [0, 128], sizes = [32, 64], strides = [1, 1]} : vector<32x192xf32> to vector<32x64xf32>
    %65 = vector.extract_strided_slice %64 {offsets = [0, 0], sizes = [32, 8], strides = [1, 1]} : vector<32x64xf32> to vector<32x8xf32>
    %66 = vector.shape_cast %65 : vector<32x8xf32> to vector<2x16x8xf32>
    %67 = vector.extract_strided_slice %64 {offsets = [0, 8], sizes = [32, 8], strides = [1, 1]} : vector<32x64xf32> to vector<32x8xf32>
    %68 = vector.shape_cast %67 : vector<32x8xf32> to vector<2x16x8xf32>
    %69 = vector.extract_strided_slice %64 {offsets = [0, 16], sizes = [32, 8], strides = [1, 1]} : vector<32x64xf32> to vector<32x8xf32>
    %70 = vector.shape_cast %69 : vector<32x8xf32> to vector<2x16x8xf32>
    %71 = vector.extract_strided_slice %64 {offsets = [0, 24], sizes = [32, 8], strides = [1, 1]} : vector<32x64xf32> to vector<32x8xf32>
    %72 = vector.shape_cast %71 : vector<32x8xf32> to vector<2x16x8xf32>
    %73 = vector.extract_strided_slice %64 {offsets = [0, 32], sizes = [32, 8], strides = [1, 1]} : vector<32x64xf32> to vector<32x8xf32>
    %74 = vector.shape_cast %73 : vector<32x8xf32> to vector<2x16x8xf32>
    %75 = vector.extract_strided_slice %64 {offsets = [0, 40], sizes = [32, 8], strides = [1, 1]} : vector<32x64xf32> to vector<32x8xf32>
    %76 = vector.shape_cast %75 : vector<32x8xf32> to vector<2x16x8xf32>
    %77 = vector.extract_strided_slice %64 {offsets = [0, 48], sizes = [32, 8], strides = [1, 1]} : vector<32x64xf32> to vector<32x8xf32>
    %78 = vector.shape_cast %77 : vector<32x8xf32> to vector<2x16x8xf32>
    %79 = vector.extract_strided_slice %64 {offsets = [0, 56], sizes = [32, 8], strides = [1, 1]} : vector<32x64xf32> to vector<32x8xf32>
    %80 = vector.shape_cast %79 : vector<32x8xf32> to vector<2x16x8xf32>
    %81 = vector.shape_cast %66 : vector<2x16x8xf32> to vector<1x2x16x8xf32>
    %82 = vector.shape_cast %68 : vector<2x16x8xf32> to vector<1x2x16x8xf32>
    %83 = vector.shape_cast %70 : vector<2x16x8xf32> to vector<1x2x16x8xf32>
    %84 = vector.shape_cast %72 : vector<2x16x8xf32> to vector<1x2x16x8xf32>
    %85 = vector.shape_cast %74 : vector<2x16x8xf32> to vector<1x2x16x8xf32>
    %86 = vector.shape_cast %76 : vector<2x16x8xf32> to vector<1x2x16x8xf32>
    %87 = vector.shape_cast %78 : vector<2x16x8xf32> to vector<1x2x16x8xf32>
    %88 = vector.shape_cast %80 : vector<2x16x8xf32> to vector<1x2x16x8xf32>
    %89 = tpu.concatenate %81, %82, %83, %84, %85, %86, %87, %88 in 0 : vector<1x2x16x8xf32>, vector<1x2x16x8xf32>, vector<1x2x16x8xf32>, vector<1x2x16x8xf32>, vector<1x2x16x8xf32>, vector<1x2x16x8xf32>, vector<1x2x16x8xf32>, vector<1x2x16x8xf32> -> vector<8x2x16x8xf32>
    %90 = vector.shape_cast %89 : vector<8x2x16x8xf32> to vector<16x16x8xf32>
    %91 = arith.truncf %90 : vector<16x16x8xf32> to vector<16x16x8xbf16>
    "tpu.trace_start"() <{level = 10 : i32, message = "bqd,bkd->bqk"}> : () -> ()
    %cst_5 = arith.constant dense<0.000000e+00> : vector<16x16x16xf32>
    %92 = tpu.matmul %35, %63, %cst_5 {dimension_numbers = #tpu.dot_dimension_numbers<[2], [2], [1], [1], [0, 0, 0, 1, 1, 1], [0], [0]>} : vector<16x16x8xbf16>, vector<16x16x8xbf16>, vector<16x16x16xf32> -> vector<16x16x16xf32>
    "tpu.trace_stop"() : () -> ()
    %cst_6 = arith.constant dense<0xFF800000> : vector<16x16xf32>
    %93 = vector.multi_reduction <maximumf>, %92, %cst_6 [2] : vector<16x16x16xf32> to vector<16x16xf32>
    %94 = vector.shape_cast %93 : vector<16x16xf32> to vector<16x16x1xf32>
    %95 = vector.broadcast %94 : vector<16x16x1xf32> to vector<16x16x16xf32>
    %96 = arith.subf %92, %95 : vector<16x16x16xf32>
    %97 = math.exp %96 : vector<16x16x16xf32>
    %cst_7 = arith.constant dense<0.000000e+00> : vector<16x16xf32>
    %98 = vector.multi_reduction <add>, %97, %cst_7 [2] : vector<16x16x16xf32> to vector<16x16xf32>
    %99 = vector.shape_cast %98 : vector<16x16xf32> to vector<16x16x1xf32>
    %100 = tpu.reciprocal %99 {approx = true} : vector<16x16x1xf32> -> vector<16x16x1xf32>
    %cst_8 = arith.constant 1.250000e-01 : f32
    %101 = vector.broadcast %cst_8 : f32 to vector<16x16x1xf32>
    %102 = arith.mulf %100, %101 : vector<16x16x1xf32>
    %103 = vector.broadcast %102 : vector<16x16x1xf32> to vector<16x16x16xf32>
    %104 = arith.mulf %97, %103 : vector<16x16x16xf32>
    %105 = arith.truncf %104 : vector<16x16x16xf32> to vector<16x16x16xbf16>
    "tpu.trace_start"() <{level = 10 : i32, message = "bqk,bkd->bqd"}> : () -> ()
    %cst_9 = arith.constant dense<0.000000e+00> : vector<16x16x8xf32>
    %106 = tpu.matmul %105, %91, %cst_9 {dimension_numbers = #tpu.dot_dimension_numbers<[2], [1], [1], [2], [0, 0, 0, 1, 1, 2], [0], [0]>} : vector<16x16x16xbf16>, vector<16x16x8xbf16>, vector<16x16x8xf32> -> vector<16x16x8xf32>
    "tpu.trace_stop"() : () -> ()
    %107 = vector.shape_cast %106 : vector<16x16x8xf32> to vector<8x2x16x8xf32>
    %108 = vector.shape_cast %107 : vector<8x2x16x8xf32> to vector<8x32x8xf32>
    %109 = arith.truncf %108 : vector<8x32x8xf32> to vector<8x32x8xbf16>
    %c0_10 = arith.constant 0 : index
    %c0_11 = arith.constant 0 : index
    %c0_12 = arith.constant 0 : index
    %110 = vector.load %arg3[%c0_10, %c0_11, %c0_12] : memref<8x8x64xbf16, #tpu.memory_space<vmem>>, vector<8x8x64xbf16>
    "tpu.trace_start"() <{level = 10 : i32, message = "hmd,hde->hme"}> : () -> ()
    %cst_13 = arith.constant dense<0.000000e+00> : vector<8x32x64xf32>
    %111 = tpu.matmul %109, %110, %cst_13 {dimension_numbers = #tpu.dot_dimension_numbers<[2], [1], [1], [2], [0, 0, 0, 1, 1, 2], [0], [0]>} : vector<8x32x8xbf16>, vector<8x8x64xbf16>, vector<8x32x64xf32> -> vector<8x32x64xf32>
    "tpu.trace_stop"() : () -> ()
    %cst_14 = arith.constant dense<0.000000e+00> : vector<32x64xf32>
    %112 = vector.multi_reduction <add>, %111, %cst_14 [0] : vector<8x32x64xf32> to vector<32x64xf32>
    %c0_15 = arith.constant 0 : index
    %c0_16 = arith.constant 0 : index
    %113 = vector.load %arg4[%c0_15, %c0_16] : memref<1x64xbf16, #tpu.memory_space<vmem>>, vector<1x64xbf16>
    %114 = arith.extf %113 : vector<1x64xbf16> to vector<1x64xf32>
    %115 = vector.broadcast %114 : vector<1x64xf32> to vector<32x64xf32>
    %116 = arith.addf %112, %115 : vector<32x64xf32>
    %c0_17 = arith.constant 0 : index
    %c0_18 = arith.constant 0 : index
    %117 = vector.load %arg5[%c0_17, %c0_18] : memref<32x64xf32, #tpu.memory_space<vmem>>, vector<32x64xf32>
    tpu.vector_store %arg5[%c0_17, %c0_18], %116 {strides = array<i32>} : memref<32x64xf32, #tpu.memory_space<vmem>>, vector<32x64xf32>,
    return
  }
}

</mosaic_0001>

<bundles_post_ra>
// kernel: tpu_custom_call.1
= control target key start
LH: loop header
LB: loop body
LE: loop exit
PB: predicated region body
PF: predicated region fallthrough
CT: control target
= control target key end

     0   :  { %10 = vsyncpa [#allocation3], 0  ;;  %s4484_s0 = inlined_call_operand.hbm [shape: f32[32,64], index: 0, kind: input, shape index: {}]   ;;  %s4485_s1 = inlined_call_operand.hbm [shape: bf16[64,192], index: 1, kind: input, shape index: {}]   ;;  %s4486_s2 = inlined_call_operand.vmem [shape: bf16[1,192], index: 2, kind: input, shape index: {}]   ;;  %s4487_s3 = inlined_call_operand.hbm [shape: bf16[8,8,64], index: 3, kind: input, shape index: {}]   ;;  %s4488_s4 = inlined_call_operand.vmem [shape: bf16[1,64], index: 4, kind: input, shape index: {}]   ;;  %s4489_s5 = inlined_call_operand.hbm [shape: f32[32,64], index: 5, kind: output, shape index: {}]  }
   0x1   :  { %11 = vsyncpa [#allocation6], 0 }
   0x2   :  { %12 = vsyncpa [#allocation4], 0  ;;  %s3671_s18 = smov [#allocation5]   ;;  %s3672_s20 = smov [#allocation2]  }
   0x3   :  { %s30_s19 = sshll.u32 %s3671_s18, 4  ;;  %s18_s21 = sshll.u32 %s3672_s20, 4  ;;  %s31_s19 = int_to_ptr.vmem [resolvable:$true] %s30_s19  ;;  %s19_s21 = int_to_ptr.vmem [resolvable:$true] %s18_s21 }
   0x4   :  { %s3593_s22 = scalar_lea.vmem %s31_s19, 1024  ;;  %p3598_p1 = scmp.lt.s32.totalorder %s31_s19, %s31_s19 }
   0x5   :  { %p3594_p0 = scmp.ne.s32.totalorder %s31_s19, %s3593_s22  ;;  %p3599_p2 = scmp.lt.s32.totalorder %s3593_s22, %s3593_s22 }
   0x7   :  { %p3600_p3 = por %p3599_p2, %p3598_p1 }
   0x9   :  { %p3601_p4 = pnand %p3600_p3, %p3594_p0 }
   0xb   :  { %3604 = shalt.err (!%p3601_p4)
}
   0xc   :  { %s3673_s23 = smov 128   ;;  %s3674_s24 = smov 8  }
   0xd   :  { %36 = dma.hbm_to_vmem [thread:$0]  %s4485_s1, 1024, %s31_s19, [#allocation6], %s3673_s23, %s3673_s23, %s3674_s24  }
   0xe   :  { %s3613_s27 = scalar_lea.vmem %s19_s21, 512  ;;  %p3618_p6 = scmp.lt.s32.totalorder %s19_s21, %s19_s21 }
   0xf   :  { %p3614_p5 = scmp.ne.s32.totalorder %s19_s21, %s3613_s27  ;;  %p3619_p7 = scmp.lt.s32.totalorder %s3613_s27, %s3613_s27 }
  0x11   :  { %p3620_p8 = por %p3619_p7, %p3618_p6 }
  0x13   :  { %p3621_p9 = pnand %p3620_p8, %p3614_p5 }
  0x15   :  { %3624 = shalt.err (!%p3621_p9)
}
  0x16   :  { %24 = dma.hbm_to_vmem [thread:$0]  %s4484_s0, 512, %s19_s21, [#allocation3], %s3673_s23, %s3673_s23, %s3674_s24  }
  0x17   :  { %s3675_s30 = smov [#allocation7]  }
  0x18   :  { %s44_s6 = sshll.u32 %s3675_s30, 4  ;;  %s45_s6 = int_to_ptr.vmem [resolvable:$true] %s44_s6 }
  0x19   :  { %s3633_s7 = scalar_lea.vmem %s45_s6, 512  ;;  %p3638_p11 = scmp.lt.s32.totalorder %s45_s6, %s45_s6 }
  0x1a   :  { %p3634_p10 = scmp.ne.s32.totalorder %s45_s6, %s3633_s7  ;;  %p3639_p12 = scmp.lt.s32.totalorder %s3633_s7, %s3633_s7 }
  0x1c   :  { %p3640_p13 = por %p3639_p12, %p3638_p11 }
  0x1e   :  { %p3641_p0 = pnand %p3640_p13, %p3634_p10 }
  0x20   :  { %3644 = shalt.err (!%p3641_p0)
}
  0x21   :  { %s3676_s1 = smov 64   ;;  %s3677_s8 = smov 4  }
  0x22   :  { %50 = dma.hbm_to_vmem [thread:$0]  %s4487_s3, 512, %s45_s6, [#allocation6], %s3676_s1, %s3676_s1, %s3677_s8  }
  0x23   :  { %3665 = dma.done.wait [#allocation3], 512  }
  0x24   :  { %3666 = vsyncadd [#allocation3], 4294966784 }
  0x25   :  { %3667 = dma.done.wait [#allocation6], 1536  }
  0x26   :  { %3668 = vsyncadd [#allocation6], 4294965760  ;;  %v3678_v0 = vmov 0   ;;  %v3445_v1 = vld [vmem:[#allocation5 + $0x34] ss:$8 sps:$4 sm:$0xff]   ;;  %v63_v9 = vld [vmem:[#allocation2] sm:$0xff]  ;;  %v80_v15 = vlaneseq }
  0x27   :  { %177 = vmatprep.mubr.bf16.mxu0 %v3678_v0  ;;  %v3447_v2 = vld [vmem:[#allocation5 + $0x30] ss:$8 sps:$4 sm:$0xff]   ;;  %153 = vmatprep.subr.bf16.mxu0 %v3445_v1  ;;  %v3448_v3 = vld [vmem:[#allocation5 + $0x24] ss:$8 sps:$4 sm:$0xff]   ;;  %v3450_v4 = vld [vmem:[#allocation5 + $0x20] ss:$8 sps:$4 sm:$0xff]  }
  0x28   :  { %154 = vmatpush1.bf16.msra.mxu0 %v3447_v2  ;;  %v3451_v5 = vld [vmem:[#allocation5 + $0x14] ss:$8 sps:$4 sm:$0xff]   ;;  %v3453_v6 = vld [vmem:[#allocation5 + $0x10] ss:$8 sps:$4 sm:$0xff]   ;;  %v3454_v7 = vld [vmem:[#allocation5 + $0x4] ss:$8 sps:$4 sm:$0xff]  }
  0x29   :  { %155 = vmatprep.subr.bf16.mxu0 %v3448_v3  ;;  %v3456_v8 = vld [vmem:[#allocation5] ss:$8 sps:$4 sm:$0xff]   ;;  %vm138_vm0 = vcmask 523264   ;;  %v65_v12 = vld [vmem:[#allocation2 + $0x10] sm:$0xff]  ;;  %v66_v13 = vld [vmem:[#allocation2 + $0x18] sm:$0xff]  ;;  %v81_v16 = vshrl.u32 %v80_v15, 7 }
  0x2a   :  { %v64_v10 = vld [vmem:[#allocation2 + $0x8] sm:$0xff]  ;;  %v68_v14 = vpack.c.bf16 %v66_v13, %v65_v12  ;;  %v77_v17 = vld [vmem:[%s4486_s2] sm:$0x3]  ;;  %s3679_s2 = smov 112   ;;  %s3680_s11 = smov 120   ;;  %v3683_v47 = vmov 0.0  }
  0x2b   :  { %v67_v11 = vpack.c.bf16 %v64_v10, %v63_v9  ;;  %v78_v18 = vunpack.c.l.bf16 %v77_v17  ;;  %v3741_v19 = vsub.s32 0, %v81_v16  ;;  %v86_v20 = vsub.s32 2, %v81_v16  ;;  %s3681_s12 = smov 104   ;;  %s3682_s13 = smov 96   ;;  %3039 = vmatprep.subr.bf16.mxu1 %v3683_v47 }
  0x2c   :  { %156 = vmatpush1.bf16.msra.mxu0 %v3450_v4  ;;  %s3684_s14 = smov 88   ;;  %vm3685_vm1 = vmmov 0   ;;  %s3686_s15 = smov 80   ;;  %vm409_vm2 = vcmask 64512   ;;  %vm1207_vm3 = vcmask 130048   ;;  %vm2342_vm4 = vcmask 1043456  }
  0x2d   :  { %157 = vmatprep.subr.bf16.mxu0 %v3451_v5  ;;  %v83_v21 = vrot.slane %v78_v18, %v3741_v19  ;;  %v87_v22 = vrot.slane %v78_v18, %v86_v20  ;;  %3041 = vmatprep.mubr.msk.bf16.mxu1 %vm3685_vm1, %v3683_v47  ;;  %s3687_s16 = smov 72  }
  0x2f   :  { %v93_v24 = vrot.slane %v83_v21, %v3741_v19  ;;  %v97_v26 = vrot.slane %v87_v22, %v3741_v19 }
  0x30   :  { %158 = vmatpush1.bf16.msra.mxu0 %v3453_v6 }
  0x31   :  { %159 = vmatprep.subr.bf16.mxu0 %v3454_v7 }
  0x34   :  { %160 = vmatpush1.bf16.msra.mxu0 %v3456_v8 }
  0x35   :  { %3057 = vmatprep.subr.bf16.mxu0 %v3683_v47 }
  0x37   :  { %2901 = vmatmul.mubr.msk.bf16.vlgmr.msra.gmra.mxu0 %vm138_vm0, %v67_v11 }
  0x38   :  { %187 = vmatprep.mubr.bf16.mxu0 %v3678_v0 }
  0x3f   :  { %2902 = vmatmul.mubr.msk.bf16.gmra.mxu0 %vm138_vm0, %v68_v14 }
  0x40   :  { %3059 = vmatprep.mubr.msk.bf16.mxu0 %vm3685_vm1, %v3683_v47 }
  0xf7   :  { %v179_v23 = vpop.f32.mrf.mxu0 }
  0xf8   :  { %v180_v28 = vadd.f32 %v179_v23, %v93_v24 }
  0xf9   :  { %v181_v25 = vpop.f32.mrf.mxu0 }
  0xfa   :  { %v3746_v31 = vadd.f32 %v181_v25, %v97_v26 }
  0xfb   :  { %v183_v27 = vpop.f32.mrf.mxu0 }
  0xfc   :  { %v184_v29 = vadd.f32 %v183_v27, %v93_v24 }
  0xfd   :  { %v185_v30 = vpop.f32.mrf.mxu0 }
  0xfe   :  { %v3748_v32 = vadd.f32 %v185_v30, %v97_v26  ;;  %v3315_v33 = vpack.i.bf16 %v184_v29, %v180_v28  ;;  %v3784_v48 = vpack.c.bf16 %v184_v29, %v180_v28 }
  0xff   :  { %v189_v34 = vpop.f32.mrf.mxu0 }
 0x100   :  { %3316 = vrot.lane.b32.xlu1 %v3315_v33, %s3679_s2  ;;  %3306 = vrot.lane.b32.xlu0 %v3315_v33, %s3680_s11  ;;  %v3754_v35 = vpack.i.bf16 %v3748_v32, %v3746_v31  ;;  %v390_v37 = vpack.c.bf16 %v3748_v32, %v3746_v31  ;;  %v190_v39 = vadd.f32 %v189_v34, %v93_v24 }
 0x101   :  { %v191_v36 = vpop.f32.mrf.mxu0 }
 0x102   :  { %v3760_v44 = vadd.f32 %v191_v36, %v97_v26 }
 0x103   :  { %v193_v38 = vpop.f32.mrf.mxu0 }
 0x104   :  { %v194_v40 = vadd.f32 %v193_v38, %v93_v24 }
 0x105   :  { %v195_v41 = vpop.f32.mrf.mxu0 }
 0x106   :  { %v3758_v42 = vadd.f32 %v195_v41, %v97_v26  ;;  %v3320_v43 = vpack.i.bf16 %v194_v40, %v190_v39  ;;  %v3789_v49 = vpack.c.bf16 %v194_v40, %v190_v39 }
 0x108   :  { %3321 = vrot.lane.b32.xlu1 %v3320_v43, %s3679_s2  ;;  %3311 = vrot.lane.b32.xlu0 %v3320_v43, %s3680_s11  ;;  %v391_v45 = vpack.c.bf16 %v3758_v42, %v3760_v44  ;;  %v3768_v46 = vpack.i.bf16 %v3758_v42, %v3760_v44 }
 0x10c   :  { %3331 = vrot.lane.b32.xlu1 %v3320_v43, %s3681_s12  ;;  %3326 = vrot.lane.b32.xlu0 %v3315_v33, %s3681_s12 }
 0x110   :  { %3341 = vrot.lane.b32.xlu1 %v3320_v43, %s3682_s13  ;;  %3336 = vrot.lane.b32.xlu0 %v3315_v33, %s3682_s13 }
 0x114   :  { %3351 = vrot.lane.b32.xlu1 %v3320_v43, %s3684_s14  ;;  %3346 = vrot.lane.b32.xlu0 %v3315_v33, %s3684_s14 }
 0x118   :  { %3361 = vrot.lane.b32.xlu1 %v3320_v43, %s3686_s15  ;;  %3356 = vrot.lane.b32.xlu0 %v3315_v33, %s3686_s15 }
 0x11c   :  { %3366 = vrot.lane.b32.xlu1 %v3315_v33, %s3687_s16  ;;  %407 = vrot.lane.b32.xlu0 %v3784_v48, %s3676_s1 }
 0x120   :  { %458 = vrot.lane.b32.xlu1 %v3789_v49, %s3676_s1  ;;  %3371 = vrot.lane.b32.xlu0 %v3320_v43, %s3687_s16 }
 0x172   :  { %v3317_v50 = vpop.permute.xlu1 %3316  ;;  %v3307_v51 = vpop.permute.xlu0 %3306 }
 0x173   :  { %v3309_v52 = vunpack.i.h.bf16 %v3307_v51  ;;  %v3308_v53 = vunpack.i.l.bf16 %v3307_v51  ;;  %v3319_v55 = vunpack.i.h.bf16 %v3317_v50  ;;  %v3318_v56 = vunpack.i.l.bf16 %v3317_v50 }
 0x175   :  { %v3794_v54 = vpack.c.bf16 %v3309_v52, %v3308_v53  ;;  %v3798_v57 = vpack.c.bf16 %v3319_v55, %v3318_v56 }
 0x177   :  { %508 = vrot.lane.b32.xlu0 %v3794_v54, %s3676_s1 }
 0x17a   :  { %v3322_v58 = vpop.permute.xlu1 %3321  ;;  %v3312_v59 = vpop.permute.xlu0 %3311 }
 0x17b   :  { %608 = vrot.lane.b32.xlu0 %v3798_v57, %s3676_s1  ;;  %v3314_v60 = vunpack.i.h.bf16 %v3312_v59  ;;  %v3313_v61 = vunpack.i.l.bf16 %v3312_v59  ;;  %v3324_v63 = vunpack.i.h.bf16 %v3322_v58  ;;  %v3323_v0 = vunpack.i.l.bf16 %v3322_v58 }
 0x17d   :  { %v3802_v62 = vpack.c.bf16 %v3314_v60, %v3313_v61  ;;  %v3806_v5 = vpack.c.bf16 %v3324_v63, %v3323_v0 }
 0x17e   :  { %v3332_v1 = vpop.permute.xlu1 %3331  ;;  %v3327_v2 = vpop.permute.xlu0 %3326 }
 0x17f   :  { %558 = vrot.lane.b32.xlu1 %v3802_v62, %s3676_s1  ;;  %v3329_v3 = vunpack.i.h.bf16 %v3327_v2  ;;  %v3328_v4 = vunpack.i.l.bf16 %v3327_v2  ;;  %v3334_v7 = vunpack.i.h.bf16 %v3332_v1  ;;  %v3333_v8 = vunpack.i.l.bf16 %v3332_v1 }
 0x181   :  { %v3808_v6 = vpack.c.bf16 %v3329_v3, %v3328_v4  ;;  %v3814_v13 = vpack.c.bf16 %v3334_v7, %v3333_v8 }
 0x182   :  { %v3342_v9 = vpop.permute.xlu1 %3341  ;;  %v3337_v10 = vpop.permute.xlu0 %3336 }
 0x183   :  { %658 = vrot.lane.b32.xlu1 %v3806_v5, %s3676_s1  ;;  %708 = vrot.lane.b32.xlu0 %v3808_v6, %s3676_s1  ;;  %v3339_v11 = vunpack.i.h.bf16 %v3337_v10  ;;  %v3338_v12 = vunpack.i.l.bf16 %v3337_v10  ;;  %v3344_v15 = vunpack.i.h.bf16 %v3342_v9  ;;  %v3343_v16 = vunpack.i.l.bf16 %v3342_v9 }
 0x185   :  { %v3816_v14 = vpack.c.bf16 %v3339_v11, %v3338_v12  ;;  %v3822_v22 = vpack.c.bf16 %v3344_v15, %v3343_v16 }
 0x186   :  { %v3352_v17 = vpop.permute.xlu1 %3351  ;;  %v3347_v18 = vpop.permute.xlu0 %3346 }
 0x187   :  { %758 = vrot.lane.b32.xlu1 %v3814_v13, %s3676_s1  ;;  %808 = vrot.lane.b32.xlu0 %v3816_v14, %s3676_s1  ;;  %v3349_v20 = vunpack.i.h.bf16 %v3347_v18  ;;  %v3348_v21 = vunpack.i.l.bf16 %v3347_v18  ;;  %v3354_v24 = vunpack.i.h.bf16 %v3352_v17  ;;  %v3353_v25 = vunpack.i.l.bf16 %v3352_v17 }
 0x189   :  { %v3824_v23 = vpack.c.bf16 %v3349_v20, %v3348_v21  ;;  %v3830_v34 = vpack.c.bf16 %v3354_v24, %v3353_v25 }
 0x18a   :  { %v3362_v26 = vpop.permute.xlu1 %3361  ;;  %v3357_v27 = vpop.permute.xlu0 %3356 }
 0x18b   :  { %v3359_v28 = vunpack.i.h.bf16 %v3357_v27  ;;  %v3358_v29 = vunpack.i.l.bf16 %v3357_v27  ;;  %858 = vrot.lane.b32.xlu1 %v3822_v22, %s3676_s1  ;;  %908 = vrot.lane.b32.xlu0 %v3824_v23, %s3676_s1  ;;  %v3364_v30 = vunpack.i.h.bf16 %v3362_v26  ;;  %v3363_v33 = vunpack.i.l.bf16 %v3362_v26 }
 0x18d   :  { %v3832_v36 = vpack.c.bf16 %v3359_v28, %v3358_v29  ;;  %v3839_v50 = vpack.c.bf16 %v3364_v30, %v3363_v33 }
 0x18e   :  { %v3367_v38 = vpop.permute.xlu1 %3366  ;;  %v408_v39 = vpop.permute.xlu0 %407 }
 0x18f   :  { %v3369_v40 = vunpack.i.h.bf16 %v3367_v38  ;;  %v3368_v41 = vunpack.i.l.bf16 %v3367_v38  ;;  %958 = vrot.lane.b32.xlu1 %v3830_v34, %s3676_s1  ;;  %1008 = vrot.lane.b32.xlu0 %v3832_v36, %s3676_s1  ;;  %v414_v43 = vsel %vm409_vm2, %v408_v39, 0 }
 0x190   :  { %3040 = vmatpush3.bf16.xpose.msra.mxu1 %v414_v43 }
 0x191   :  { %v3841_v51 = vpack.c.bf16 %v3369_v40, %v3368_v41  ;;  %3045 = vmatprep.subr.bf16.mxu1 %v3683_v47 }
 0x192   :  { %v3372_v52 = vpop.permute.xlu0 %3371  ;;  %v459_v56 = vpop.permute.xlu1 %458 }
 0x193   :  { %v3374_v53 = vunpack.i.h.bf16 %v3372_v52  ;;  %v3373_v55 = vunpack.i.l.bf16 %v3372_v52  ;;  %1058 = vrot.lane.b32.xlu1 %v3839_v50, %s3676_s1  ;;  %1108 = vrot.lane.b32.xlu0 %v3841_v51, %s3676_s1  ;;  %v464_v59 = vsel %vm409_vm2, %v459_v56, 0 }
 0x195   :  { %v3848_v58 = vpack.c.bf16 %v3374_v53, %v3373_v55 }
 0x197   :  { %3381 = vrot.lane.b32.xlu0 %v3768_v46, %s3680_s11  ;;  %3042 = vmatmul.mubr.msk.bf16.vlgmr.msra.gmra.mxu1 %vm409_vm2, %v3784_v48 }
 0x198   :  { %1158 = vrot.lane.b32.xlu1 %v3848_v58, %s3676_s1  ;;  %3046 = vmatpush3.bf16.xpose.msra.mxu1 %v464_v59 }
 0x199   :  { %3047 = vmatprep.mubr.msk.bf16.mxu1 %vm3685_vm1, %v3683_v47  ;;  %3051 = vmatprep.subr.bf16.mxu1 %v3683_v47 }
 0x19b   :  { %3391 = vrot.lane.b32.xlu0 %v3768_v46, %s3679_s2 }
 0x19c   :  { %3376 = vrot.lane.b32.xlu1 %v3754_v35, %s3680_s11 }
 0x19f   :  { %3401 = vrot.lane.b32.xlu0 %v3768_v46, %s3681_s12  ;;  %3048 = vmatmul.mubr.msk.bf16.vlgmr.msra.gmra.mxu1 %vm409_vm2, %v3789_v49 }
 0x1a0   :  { %3386 = vrot.lane.b32.xlu1 %v3754_v35, %s3679_s2  ;;  %3053 = vmatprep.mubr.msk.bf16.mxu1 %vm3685_vm1, %v3683_v47 }
 0x1a3   :  { %3411 = vrot.lane.b32.xlu0 %v3768_v46, %s3682_s13 }
 0x1a4   :  { %3396 = vrot.lane.b32.xlu1 %v3754_v35, %s3681_s12 }
 0x1a8   :  { %3406 = vrot.lane.b32.xlu1 %v3754_v35, %s3682_s13 }
 0x1ac   :  { %3416 = vrot.lane.b32.xlu1 %v3754_v35, %s3684_s14 }
 0x1b0   :  { %3421 = vrot.lane.b32.xlu1 %v3768_v46, %s3684_s14 }
 0x1e9   :  { %v509_v48 = vpop.permute.xlu0 %508 }
 0x1ea   :  { %v514_v49 = vsel %vm409_vm2, %v509_v48, 0 }
 0x1eb   :  { %3052 = vmatpush3.bf16.xpose.msra.mxu1 %v514_v49 }
 0x1ec   :  { %3063 = vmatprep.subr.bf16.mxu1 %v3683_v47 }
 0x1ed   :  { %v609_v60 = vpop.permute.xlu0 %608 }
 0x1ee   :  { %v614_v63 = vsel %vm409_vm2, %v609_v60, 0 }
 0x1f1   :  { %v559_v61 = vpop.permute.xlu1 %558 }
 0x1f2   :  { %v564_v0 = vsel %vm409_vm2, %v559_v61, 0  ;;  %3054 = vmatmul.mubr.msk.bf16.vlgmr.msra.gmra.mxu1 %vm409_vm2, %v3794_v54 }
 0x1f3   :  { %3058 = vmatpush3.bf16.xpose.msra.mxu0 %v564_v0  ;;  %3064 = vmatpush3.bf16.xpose.msra.mxu1 %v614_v63 }
 0x1f4   :  { %3065 = vmatprep.mubr.msk.bf16.mxu1 %vm3685_vm1, %v3683_v47  ;;  %3069 = vmatprep.subr.bf16.mxu0 %v3683_v47 }
 0x1f5   :  { %3075 = vmatprep.subr.bf16.mxu1 %v3683_v47  ;;  %v659_v1 = vpop.permute.xlu1 %658  ;;  %v709_v2 = vpop.permute.xlu0 %708 }
 0x1f6   :  { %v664_v3 = vsel %vm409_vm2, %v659_v1, 0  ;;  %v714_v4 = vsel %vm409_vm2, %v709_v2, 0 }
 0x1f9   :  { %v759_v54 = vpop.permute.xlu1 %758  ;;  %v809_v7 = vpop.permute.xlu0 %808 }
 0x1fa   :  { %3060 = vmatmul.mubr.msk.bf16.vlgmr.msra.gmra.mxu0 %vm409_vm2, %v3802_v62  ;;  %3066 = vmatmul.mubr.msk.bf16.vlgmr.msra.gmra.mxu1 %vm409_vm2, %v3798_v57  ;;  %v764_v8 = vsel %vm409_vm2, %v759_v54, 0  ;;  %v814_v62 = vsel %vm409_vm2, %v809_v7, 0 }
 0x1fb   :  { %3070 = vmatpush3.bf16.xpose.msra.mxu0 %v664_v3  ;;  %3076 = vmatpush3.bf16.xpose.msra.mxu1 %v714_v4 }
 0x1fc   :  { %3071 = vmatprep.mubr.msk.bf16.mxu0 %vm3685_vm1, %v3683_v47  ;;  %3077 = vmatprep.mubr.msk.bf16.mxu1 %vm3685_vm1, %v3683_v47 }
 0x1fd   :  { %3081 = vmatprep.subr.bf16.mxu0 %v3683_v47  ;;  %3087 = vmatprep.subr.bf16.mxu1 %v3683_v47  ;;  %v859_v57 = vpop.permute.xlu1 %858  ;;  %v909_v9 = vpop.permute.xlu0 %908 }
 0x1fe   :  { %v864_v10 = vsel %vm409_vm2, %v859_v57, 0 }
 0x201   :  { %v1009_v11 = vpop.permute.xlu0 %1008 }
 0x202   :  { %3072 = vmatmul.mubr.msk.bf16.vlgmr.msra.gmra.mxu0 %vm409_vm2, %v3806_v5  ;;  %3078 = vmatmul.mubr.msk.bf16.vlgmr.msra.gmra.mxu1 %vm409_vm2, %v3808_v6  ;;  %v914_v5 = vsel %vm409_vm2, %v909_v9, 0  ;;  %v959_v6 = vpop.permute.xlu1 %958 }
 0x203   :  { %3082 = vmatpush3.bf16.xpose.msra.mxu0 %v764_v8  ;;  %3088 = vmatpush3.bf16.xpose.msra.mxu1 %v814_v62  ;;  %v964_v12 = vsel %vm409_vm2, %v959_v6, 0 }
 0x204   :  { %3083 = vmatprep.mubr.msk.bf16.mxu0 %vm3685_vm1, %v3683_v47  ;;  %3089 = vmatprep.mubr.msk.bf16.mxu1 %vm3685_vm1, %v3683_v47 }
 0x205   :  { %3093 = vmatprep.subr.bf16.mxu0 %v3683_v47  ;;  %3099 = vmatprep.subr.bf16.mxu1 %v3683_v47  ;;  %v1109_v15 = vpop.permute.xlu0 %1108 }
 0x206   :  { %v1114_v17 = vsel %vm409_vm2, %v1109_v15, 0 }
 0x20a   :  { %3084 = vmatmul.mubr.msk.bf16.vlgmr.msra.gmra.mxu0 %vm409_vm2, %v3814_v13  ;;  %3090 = vmatmul.mubr.msk.bf16.vlgmr.msra.gmra.mxu1 %vm409_vm2, %v3816_v14  ;;  %v1014_v13 = vsel %vm409_vm2, %v1009_v11, 0  ;;  %v1059_v14 = vpop.permute.xlu1 %1058 }
 0x20b   :  { %3094 = vmatpush3.bf16.xpose.msra.mxu0 %v864_v10  ;;  %3100 = vmatpush3.bf16.xpose.msra.mxu1 %v914_v5  ;;  %v1064_v16 = vsel %vm409_vm2, %v1059_v14, 0  ;;  %v4040_v5 = vpop.permute.xlu0 %3381 }
 0x20c   :  { %3095 = vmatprep.mubr.msk.bf16.mxu0 %vm3685_vm1, %v3683_v47  ;;  %3101 = vmatprep.mubr.msk.bf16.mxu1 %vm3685_vm1, %v3683_v47 }
 0x20d   :  { %3105 = vmatprep.subr.bf16.mxu0 %v3683_v47  ;;  %3111 = vmatprep.subr.bf16.mxu1 %v3683_v47 }
 0x20e   :  { %v1159_v18 = vpop.permute.xlu1 %1158 }
 0x20f   :  { %v1164_v20 = vsel %vm409_vm2, %v1159_v18, 0 }
 0x212   :  { %3096 = vmatmul.mubr.msk.bf16.vlgmr.msra.gmra.mxu0 %vm409_vm2, %v3822_v22  ;;  %3102 = vmatmul.mubr.msk.bf16.vlgmr.msra.gmra.mxu1 %vm409_vm2, %v3824_v23  ;;  %v4020_v61 = vpop.permute.xlu1 %3376 }
 0x213   :  { %3106 = vmatpush3.bf16.xpose.msra.mxu0 %v964_v12  ;;  %3112 = vmatpush3.bf16.xpose.msra.mxu1 %v1014_v13 }
 0x214   :  { %3107 = vmatprep.mubr.msk.bf16.mxu0 %vm3685_vm1, %v3683_v47  ;;  %3113 = vmatprep.mubr.msk.bf16.mxu1 %vm3685_vm1, %v3683_v47 }
 0x215   :  { %3117 = vmatprep.subr.bf16.mxu0 %v3683_v47  ;;  %3123 = vmatprep.subr.bf16.mxu1 %v3683_v47 }
 0x216   :  { %v4034_v8 = vpop.permute.xlu1 %3386 }
 0x21a   :  { %3108 = vmatmul.mubr.msk.bf16.vlgmr.msra.gmra.mxu0 %vm409_vm2, %v3830_v34  ;;  %3114 = vmatmul.mubr.msk.bf16.vlgmr.msra.gmra.mxu1 %vm409_vm2, %v3832_v36 }
 0x21b   :  { %3118 = vmatpush3.bf16.xpose.msra.mxu0 %v1064_v16  ;;  %3124 = vmatpush3.bf16.xpose.msra.mxu1 %v1114_v17  ;;  %v4050_v16 = vpop.permute.xlu1 %3396 }
 0x21c   :  { %3119 = vmatprep.mubr.msk.bf16.mxu0 %vm3685_vm1, %v3683_v47  ;;  %3125 = vmatprep.mubr.msk.bf16.mxu1 %vm3685_vm1, %v3683_v47 }
 0x21d   :  { %3129 = vmatprep.subr.bf16.mxu0 %v3683_v47  ;;  %3135 = vmatprep.subr.bf16.mxu1 %v3683_v47 }
 0x222   :  { %3120 = vmatmul.mubr.msk.bf16.vlgmr.msra.gmra.mxu0 %vm409_vm2, %v3839_v50  ;;  %3126 = vmatmul.mubr.msk.bf16.vlgmr.msra.gmra.mxu1 %vm409_vm2, %v3841_v51 }
 0x223   :  { %3130 = vmatpush3.bf16.xpose.msra.mxu0 %v1164_v20  ;;  %3136 = vmatpush3.bf16.msra.mxu1 %v390_v37  ;;  %v4056_v20 = vpop.permute.xlu0 %3391 }
 0x224   :  { %3131 = vmatprep.mubr.msk.bf16.mxu0 %vm3685_vm1, %v3683_v47  ;;  %3141 = vmatprep.subr.bf16.mxu0 %v3683_v47 }
 0x225   :  { %3137 = vmatprep.mubr.msk.bf16.mxu1 %vm3685_vm1, %v3683_v47  ;;  %3147 = vmatprep.subr.bf16.mxu1 %v3683_v47 }
 0x22a   :  { %3132 = vmatmul.mubr.msk.bf16.vlgmr.msra.gmra.mxu0 %vm409_vm2, %v3848_v58 }
 0x22b   :  { %3142 = vmatpush3.bf16.msra.mxu0 %v391_v45  ;;  %3143 = vmatprep.mubr.msk.bf16.mxu0 %vm3685_vm1, %v3683_v47 }
 0x22c   :  { %3153 = vmatprep.subr.bf16.mxu0 %v3683_v47 }
 0x257   :  { %v3974_v31 = vpop.f32.mrf.mxu1 }
 0x258   :  { %v1208_v32 = vsel %vm1207_vm3, %v3974_v31, -inf }
 0x259   :  { %1209 = vmax.xlane.f32.xlu0 %v1208_v32  ;;  %v3043_v37 = vpop.f32.mrf.mxu1 }
 0x25b   :  { %v3978_v21 = vpop.f32.mrf.mxu1 }
 0x25c   :  { %v1211_v22 = vsel %vm1207_vm3, %v3978_v21, -inf }
 0x25d   :  { %v3044_v42 = vpop.f32.mrf.mxu1  ;;  %1212 = vmax.xlane.f32.xlu1 %v1211_v22 }
 0x25f   :  { %v3982_v44 = vpop.f32.mrf.mxu1 }
 0x260   :  { %v1214_v45 = vsel %vm1207_vm3, %v3982_v44, -inf }
 0x261   :  { %1215 = vmax.xlane.f32.xlu0 %v1214_v45  ;;  %v3049_v23 = vpop.f32.mrf.mxu1 }
 0x263   :  { %v3986_v24 = vpop.f32.mrf.mxu1 }
 0x264   :  { %v1217_v25 = vsel %vm1207_vm3, %v3986_v24, -inf }
 0x265   :  { %1218 = vmax.xlane.f32.xlu0 %v1217_v25  ;;  %v3050_v26 = vpop.f32.mrf.mxu1  ;;  %v4066_v25 = vpop.permute.xlu1 %3406 }
 0x2b2   :  { %v3990_v27 = vpop.f32.mrf.mxu1 }
 0x2b3   :  { %v1220_v28 = vsel %vm1207_vm3, %v3990_v27, -inf }
 0x2b4   :  { %v3055_v29 = vpop.f32.mrf.mxu1  ;;  %1221 = vmax.xlane.f32.xlu1 %v1220_v28 }
 0x2b6   :  { %v3994_v30 = vpop.f32.mrf.mxu1 }
 0x2b7   :  { %v1223_v33 = vsel %vm1207_vm3, %v3994_v30, -inf }
 0x2b8   :  { %1224 = vmax.xlane.f32.xlu0 %v1223_v33  ;;  %v3056_v34 = vpop.f32.mrf.mxu1 }
 0x2b9   :  { %v4072_v34 = vpop.permute.xlu0 %3401 }
 0x2ba   :  { %v3998_v36 = vpop.f32.mrf.mxu0  ;;  %v4000_v38 = vpop.f32.mrf.mxu1 }
 0x2bb   :  { %v1226_v39 = vsel %vm1207_vm3, %v3998_v36, -inf  ;;  %v1232_v52 = vsel %vm1207_vm3, %v4000_v38, -inf }
 0x2bc   :  { %v3061_v40 = vpop.f32.mrf.mxu0  ;;  %v3067_v41 = vpop.f32.mrf.mxu1  ;;  %1227 = vmax.xlane.f32.xlu1 %v1226_v39 }
 0x2be   :  { %v4004_v43 = vpop.f32.mrf.mxu0  ;;  %v4006_v50 = vpop.f32.mrf.mxu1 }
 0x2bf   :  { %v1229_v51 = vsel %vm1207_vm3, %v4004_v43, -inf  ;;  %v1235_v59 = vsel %vm1207_vm3, %v4006_v50, -inf }
 0x2c0   :  { %v3062_v53 = vpop.f32.mrf.mxu0  ;;  %1230 = vmax.xlane.f32.xlu0 %v1229_v51  ;;  %v3068_v55 = vpop.f32.mrf.mxu1  ;;  %1233 = vmax.xlane.f32.xlu1 %v1232_v52 }
 0x2c1   :  { %v4082_v55 = vpop.permute.xlu1 %3416 }
 0x2c2   :  { %v4012_v56 = vpop.f32.mrf.mxu0  ;;  %v4014_v58 = vpop.f32.mrf.mxu1 }
 0x2c3   :  { %v1238_v48 = vsel %vm1207_vm3, %v4012_v56, -inf  ;;  %v1244_v2 = vsel %vm1207_vm3, %v4014_v58, -inf }
 0x2c4   :  { %v3073_v49 = vpop.f32.mrf.mxu0  ;;  %1236 = vmax.xlane.f32.xlu0 %v1235_v59  ;;  %v3079_v60 = vpop.f32.mrf.mxu1  ;;  %1239 = vmax.xlane.f32.xlu1 %v1238_v48 }
 0x2c5   :  { %v4088_v49 = vpop.permute.xlu0 %3411 }
 0x2c6   :  { %v4022_v63 = vpop.f32.mrf.mxu0  ;;  %v4024_v0 = vpop.f32.mrf.mxu1 }
 0x2c7   :  { %v1241_v1 = vsel %vm1207_vm3, %v4022_v63, -inf  ;;  %v1247_v62 = vsel %vm1207_vm3, %v4024_v0, -inf }
 0x2c8   :  { %v3074_v3 = vpop.f32.mrf.mxu0  ;;  %1242 = vmax.xlane.f32.xlu0 %v1241_v1  ;;  %v3080_v4 = vpop.f32.mrf.mxu1  ;;  %1245 = vmax.xlane.f32.xlu1 %v1244_v2 }
 0x2ca   :  { %v4030_v54 = vpop.f32.mrf.mxu0  ;;  %v4032_v7 = vpop.f32.mrf.mxu1 }
 0x2cb   :  { %v1250_v57 = vsel %vm1207_vm3, %v4030_v54, -inf  ;;  %v1256_v13 = vsel %vm1207_vm3, %v4032_v7, -inf }
 0x2cc   :  { %v3085_v9 = vpop.f32.mrf.mxu0  ;;  %1248 = vmax.xlane.f32.xlu0 %v1247_v62  ;;  %v3091_v10 = vpop.f32.mrf.mxu1  ;;  %1251 = vmax.xlane.f32.xlu1 %v1250_v57 }
 0x2cd   :  { %v4098_v57 = vpop.permute.xlu1 %3421 }
 0x2ce   :  { %v4042_v6 = vpop.f32.mrf.mxu0  ;;  %v4044_v11 = vpop.f32.mrf.mxu1 }
 0x2cf   :  { %v1253_v12 = vsel %vm1207_vm3, %v4042_v6, -inf  ;;  %v1259_v32 = vsel %vm1207_vm3, %v4044_v11, -inf }
 0x2d0   :  { %v3086_v14 = vpop.f32.mrf.mxu0  ;;  %1254 = vmax.xlane.f32.xlu0 %v1253_v12  ;;  %v3092_v15 = vpop.f32.mrf.mxu1  ;;  %1257 = vmax.xlane.f32.xlu1 %v1256_v13 }
 0x2d2   :  { %v4052_v17 = vpop.f32.mrf.mxu0  ;;  %v4054_v18 = vpop.f32.mrf.mxu1 }
 0x2d3   :  { %v1262_v37 = vsel %vm1207_vm3, %v4052_v17, -inf  ;;  %v1268_v28 = vsel %vm1207_vm3, %v4054_v18, -inf }
 0x2d4   :  { %v3097_v22 = vpop.f32.mrf.mxu0  ;;  %1260 = vmax.xlane.f32.xlu0 %v1259_v32  ;;  %v3103_v42 = vpop.f32.mrf.mxu1  ;;  %1263 = vmax.xlane.f32.xlu1 %v1262_v37 }
 0x2d6   :  { %v4062_v45 = vpop.f32.mrf.mxu0  ;;  %v4064_v23 = vpop.f32.mrf.mxu1 }
 0x2d7   :  { %v1265_v26 = vsel %vm1207_vm3, %v4062_v45, -inf  ;;  %v1271_v41 = vsel %vm1207_vm3, %v4064_v23, -inf }
 0x2d8   :  { %v3098_v29 = vpop.f32.mrf.mxu0  ;;  %1266 = vmax.xlane.f32.xlu0 %v1265_v26  ;;  %v3104_v33 = vpop.f32.mrf.mxu1  ;;  %1269 = vmax.xlane.f32.xlu1 %v1268_v28 }
 0x2da   :  { %v4074_v39 = vpop.f32.mrf.mxu0  ;;  %v4076_v40 = vpop.f32.mrf.mxu1 }
 0x2db   :  { %v1274_v51 = vsel %vm1207_vm3, %v4074_v39, -inf  ;;  %v1280_v1 = vsel %vm1207_vm3, %v4076_v40, -inf }
 0x2dc   :  { %v3109_v52 = vpop.f32.mrf.mxu0  ;;  %1272 = vmax.xlane.f32.xlu0 %v1271_v41  ;;  %v3115_v53 = vpop.f32.mrf.mxu1  ;;  %1275 = vmax.xlane.f32.xlu1 %v1274_v51 }
 0x2de   :  { %v4084_v59 = vpop.f32.mrf.mxu0  ;;  %v4086_v48 = vpop.f32.mrf.mxu1 }
 0x2df   :  { %v1277_v60 = vsel %vm1207_vm3, %v4084_v59, -inf  ;;  %v1283_v10 = vsel %vm1207_vm3, %v4086_v48, -inf }
 0x2e0   :  { %v3110_v2 = vpop.f32.mrf.mxu0  ;;  %1278 = vmax.xlane.f32.xlu0 %v1277_v60  ;;  %v3116_v3 = vpop.f32.mrf.mxu1  ;;  %1281 = vmax.xlane.f32.xlu1 %v1280_v1 }
 0x2e2   :  { %v4094_v4 = vpop.f32.mrf.mxu0  ;;  %v4096_v62 = vpop.f32.mrf.mxu1 }
 0x2e3   :  { %v1210_v9 = vpop.xlane.xlu0 %1209 }
 0x2e4   :  { %v1304_v12 = vsub.f32 %v3974_v31, %v1210_v9  ;;  %v3121_v13 = vpop.f32.mrf.mxu0  ;;  %1284 = vmax.xlane.f32.xlu0 %v1283_v10  ;;  %v3127_v14 = vpop.f32.mrf.mxu1 }
 0x2e6   :  { %v1336_v15 = vmul.f32 1.442695, %v1304_v12  ;;  %v4103_v32 = vpop.f32.mrf.mxu0  ;;  %v4105_v37 = vpop.f32.mrf.mxu1 }
 0x2e7   :  { %v1213_v22 = vpop.xlane.xlu1 %1212  ;;  %v1289_v13 = vsel %vm1207_vm3, %v4103_v32, -inf }
 0x2e8   :  { %3457 = vpow2.f32 %v1336_v15  ;;  %v1305_v42 = vsub.f32 %v3978_v21, %v1213_v22  ;;  %v3122_v26 = vpop.f32.mrf.mxu0  ;;  %v3128_v28 = vpop.f32.mrf.mxu1  ;;  %v1295_v22 = vsel %vm1207_vm3, %v4105_v37, -inf }
 0x2ea   :  { %v1338_v29 = vmul.f32 1.442695, %v1305_v42  ;;  %v1216_v33 = vpop.xlane.xlu0 %1215  ;;  %v4108_v41 = vpop.f32.mrf.mxu0 }
 0x2eb   :  { %v1306_v31 = vsub.f32 %v3982_v44, %v1216_v33  ;;  %v1286_v44 = vsel %vm1207_vm3, %v4094_v4, -inf  ;;  %v1298_v26 = vsel %vm1207_vm3, %v4108_v41, -inf }
 0x2ec   :  { %3459 = vpow2.f32 %v1338_v29  ;;  %v3133_v51 = vpop.f32.mrf.mxu0 }
 0x2ed   :  { %v1340_v52 = vmul.f32 1.442695, %v1306_v31 }
 0x2ee   :  { %v1219_v53 = vpop.xlane.xlu0 %1218  ;;  %v4111_v60 = vpop.f32.mrf.mxu0 }
 0x2ef   :  { %v1307_v1 = vsub.f32 %v3986_v24, %v1219_v53  ;;  %3461 = vpow2.f32 %v1340_v52  ;;  %v1292_v24 = vsel %vm1207_vm3, %v4096_v62, -inf  ;;  %v1301_v29 = vsel %vm1207_vm3, %v4111_v60, -inf }
 0x2f0   :  { %v3134_v2 = vpop.f32.mrf.mxu0 }
 0x2f1   :  { %v1342_v3 = vmul.f32 1.442695, %v1307_v1 }
 0x2f3   :  { %3463 = vpow2.f32 %v1342_v3 }
 0x2f5   :  { %v4114_v21 = vpop.eup %3457 }
 0x2f6   :  { %v1400_v9 = vsel %vm1207_vm3, %v4114_v21, 0.0 }
 0x2f7   :  { %1401 = vadd.xlane.f32.xlu1 %v1400_v9 }
 0x2f9   :  { %v4118_v10 = vpop.eup %3459 }
 0x2fa   :  { %v1403_v12 = vsel %vm1207_vm3, %v4118_v10, 0.0 }
 0x2fb   :  { %1287 = vmax.xlane.f32.xlu1 %v1286_v44  ;;  %1404 = vadd.xlane.f32.xlu0 %v1403_v12 }
 0x2fc   :  { %v4128_v14 = vpop.eup %3461 }
 0x2fd   :  { %v1406_v15 = vsel %vm1207_vm3, %v4128_v14, 0.0 }
 0x2ff   :  { %1293 = vmax.xlane.f32.xlu1 %v1292_v24  ;;  %1290 = vmax.xlane.f32.xlu0 %v1289_v13 }
 0x300   :  { %v4134_v42 = vpop.eup %3463 }
 0x301   :  { %v1409_v28 = vsel %vm1207_vm3, %v4134_v42, 0.0 }
 0x303   :  { %1407 = vadd.xlane.f32.xlu1 %v1406_v15  ;;  %1296 = vmax.xlane.f32.xlu0 %v1295_v22 }
 0x307   :  { %1299 = vmax.xlane.f32.xlu1 %v1298_v26  ;;  %1410 = vadd.xlane.f32.xlu0 %v1409_v28 }
 0x30b   :  { %1302 = vmax.xlane.f32.xlu0 %v1301_v29 }
 0x318   :  { %3431 = vrot.lane.b32.xlu1 %v3768_v46, %s3686_s15 }
 0x321   :  { %3426 = vrot.lane.b32.xlu0 %v3754_v35, %s3686_s15 }
 0x33d   :  { %v1222_v33 = vpop.xlane.xlu1 %1221 }
 0x33e   :  { %v1308_v31 = vsub.f32 %v3990_v27, %v1222_v33 }
 0x340   :  { %v1344_v51 = vmul.f32 1.442695, %v1308_v31 }
 0x341   :  { %v1225_v52 = vpop.xlane.xlu0 %1224 }
 0x342   :  { %3465 = vpow2.f32 %v1344_v51  ;;  %v1309_v53 = vsub.f32 %v3994_v30, %v1225_v52 }
 0x344   :  { %v1346_v1 = vmul.f32 1.442695, %v1309_v53 }
 0x345   :  { %v1228_v2 = vpop.xlane.xlu1 %1227 }
 0x346   :  { %3467 = vpow2.f32 %v1346_v1  ;;  %v1310_v3 = vsub.f32 %v3998_v36, %v1228_v2 }
 0x348   :  { %v1348_v9 = vmul.f32 1.442695, %v1310_v3 }
 0x349   :  { %v1231_v44 = vpop.xlane.xlu0 %1230  ;;  %v1234_v12 = vpop.xlane.xlu1 %1233 }
 0x34a   :  { %3469 = vpow2.f32 %v1348_v9  ;;  %v1311_v24 = vsub.f32 %v4004_v43, %v1231_v44  ;;  %v1312_v13 = vsub.f32 %v4000_v38, %v1234_v12 }
 0x34c   :  { %v1350_v15 = vmul.f32 1.442695, %v1311_v24  ;;  %v1352_v27 = vmul.f32 1.442695, %v1312_v13 }
 0x34d   :  { %v1237_v22 = vpop.xlane.xlu0 %1236  ;;  %v1240_v26 = vpop.xlane.xlu1 %1239 }
 0x34e   :  { %3471 = vpow2.f32 %v1350_v15  ;;  %v1313_v30 = vsub.f32 %v4006_v50, %v1237_v22  ;;  %v1314_v28 = vsub.f32 %v4012_v56, %v1240_v26 }
 0x34f   :  { %v4153_v29 = vpop.eup %3465  ;;  %3473 = vpow2.f32 %v1352_v27 }
 0x350   :  { %v1354_v36 = vmul.f32 1.442695, %v1313_v30  ;;  %v1356_v33 = vmul.f32 1.442695, %v1314_v28  ;;  %v1412_v31 = vsel %vm1207_vm3, %v4153_v29, 0.0 }
 0x351   :  { %v1243_v43 = vpop.xlane.xlu0 %1242  ;;  %1413 = vadd.xlane.f32.xlu1 %v1412_v31  ;;  %v1246_v38 = vpop.xlane.xlu1 %1245 }
 0x352   :  { %3475 = vpow2.f32 %v1354_v36  ;;  %v1315_v51 = vsub.f32 %v4022_v63, %v1243_v43  ;;  %v1316_v52 = vsub.f32 %v4014_v58, %v1246_v38 }
 0x353   :  { %v4159_v53 = vpop.eup %3467  ;;  %3477 = vpow2.f32 %v1356_v33 }
 0x354   :  { %v1358_v50 = vmul.f32 1.442695, %v1315_v51  ;;  %v1360_v56 = vmul.f32 1.442695, %v1316_v52  ;;  %v1415_v1 = vsel %vm1207_vm3, %v4159_v53, 0.0 }
 0x355   :  { %v1249_v2 = vpop.xlane.xlu0 %1248  ;;  %1416 = vadd.xlane.f32.xlu0 %v1415_v1  ;;  %v1252_v3 = vpop.xlane.xlu1 %1251 }
 0x356   :  { %3479 = vpow2.f32 %v1358_v50  ;;  %v1317_v9 = vsub.f32 %v4024_v0, %v1249_v2  ;;  %v1318_v44 = vsub.f32 %v4030_v54, %v1252_v3 }
 0x357   :  { %v4165_v12 = vpop.eup %3469  ;;  %3481 = vpow2.f32 %v1360_v56 }
 0x358   :  { %v1362_v58 = vmul.f32 1.442695, %v1317_v9  ;;  %v1364_v63 = vmul.f32 1.442695, %v1318_v44  ;;  %v1418_v24 = vsel %vm1207_vm3, %v4165_v12, 0.0 }
 0x359   :  { %v1255_v13 = vpop.xlane.xlu0 %1254  ;;  %1419 = vadd.xlane.f32.xlu1 %v1418_v24  ;;  %v1258_v15 = vpop.xlane.xlu1 %1257 }
 0x35a   :  { %3483 = vpow2.f32 %v1362_v58  ;;  %v1319_v27 = vsub.f32 %v4042_v6, %v1255_v13  ;;  %v1320_v22 = vsub.f32 %v4032_v7, %v1258_v15 }
 0x35b   :  { %v4171_v26 = vpop.eup %3471  ;;  %3485 = vpow2.f32 %v1364_v63 }
 0x35c   :  { %v4173_v0 = vpop.eup %3473  ;;  %v1366_v54 = vmul.f32 1.442695, %v1319_v27  ;;  %v1368_v30 = vmul.f32 1.442695, %v1320_v22  ;;  %v1421_v28 = vsel %vm1207_vm3, %v4171_v26, 0.0 }
 0x35d   :  { %v1261_v36 = vpop.xlane.xlu0 %1260  ;;  %1422 = vadd.xlane.f32.xlu0 %v1421_v28  ;;  %v1424_v33 = vsel %vm1207_vm3, %v4173_v0, 0.0  ;;  %v1264_v31 = vpop.xlane.xlu1 %1263 }
 0x35e   :  { %3487 = vpow2.f32 %v1366_v54  ;;  %v1321_v6 = vsub.f32 %v4044_v11, %v1261_v36  ;;  %1425 = vadd.xlane.f32.xlu1 %v1424_v33  ;;  %v1322_v7 = vsub.f32 %v4052_v17, %v1264_v31 }
 0x35f   :  { %v4181_v43 = vpop.eup %3475  ;;  %3489 = vpow2.f32 %v1368_v30 }
 0x360   :  { %v4183_v38 = vpop.eup %3477  ;;  %v1370_v51 = vmul.f32 1.442695, %v1321_v6  ;;  %v1372_v52 = vmul.f32 1.442695, %v1322_v7  ;;  %v1427_v50 = vsel %vm1207_vm3, %v4181_v43, 0.0 }
 0x361   :  { %v1267_v56 = vpop.xlane.xlu0 %1266  ;;  %1428 = vadd.xlane.f32.xlu0 %v1427_v50  ;;  %v1430_v1 = vsel %vm1207_vm3, %v4183_v38, 0.0  ;;  %v1270_v2 = vpop.xlane.xlu1 %1269 }
 0x362   :  { %3491 = vpow2.f32 %v1370_v51  ;;  %v1323_v11 = vsub.f32 %v4062_v45, %v1267_v56  ;;  %1431 = vadd.xlane.f32.xlu1 %v1430_v1  ;;  %v1324_v17 = vsub.f32 %v4054_v18, %v1270_v2 }
 0x363   :  { %v4191_v3 = vpop.eup %3479  ;;  %3493 = vpow2.f32 %v1372_v52 }
 0x364   :  { %v4193_v9 = vpop.eup %3481  ;;  %v1374_v44 = vmul.f32 1.442695, %v1323_v11  ;;  %v1376_v58 = vmul.f32 1.442695, %v1324_v17  ;;  %v1433_v63 = vsel %vm1207_vm3, %v4191_v3, 0.0 }
 0x365   :  { %v1273_v24 = vpop.xlane.xlu0 %1272  ;;  %1434 = vadd.xlane.f32.xlu0 %v1433_v63  ;;  %v1436_v13 = vsel %vm1207_vm3, %v4193_v9, 0.0  ;;  %v1276_v15 = vpop.xlane.xlu1 %1275 }
 0x366   :  { %3495 = vpow2.f32 %v1374_v44  ;;  %v1325_v45 = vsub.f32 %v4064_v23, %v1273_v24  ;;  %1437 = vadd.xlane.f32.xlu1 %v1436_v13  ;;  %v1326_v18 = vsub.f32 %v4074_v39, %v1276_v15 }
 0x367   :  { %v4201_v27 = vpop.eup %3483  ;;  %3497 = vpow2.f32 %v1376_v58 }
 0x368   :  { %v4203_v22 = vpop.eup %3485  ;;  %v1378_v54 = vmul.f32 1.442695, %v1325_v45  ;;  %v1380_v30 = vmul.f32 1.442695, %v1326_v18  ;;  %v1439_v28 = vsel %vm1207_vm3, %v4201_v27, 0.0 }
 0x369   :  { %v1279_v36 = vpop.xlane.xlu0 %1278  ;;  %1440 = vadd.xlane.f32.xlu0 %v1439_v28  ;;  %v1442_v33 = vsel %vm1207_vm3, %v4203_v22, 0.0  ;;  %v1282_v31 = vpop.xlane.xlu1 %1281 }
 0x36a   :  { %3499 = vpow2.f32 %v1378_v54  ;;  %v1327_v23 = vsub.f32 %v4084_v59, %v1279_v36  ;;  %1443 = vadd.xlane.f32.xlu1 %v1442_v33  ;;  %v1328_v39 = vsub.f32 %v4076_v40, %v1282_v31 }
 0x36b   :  { %v4211_v6 = vpop.eup %3487  ;;  %3501 = vpow2.f32 %v1380_v30 }
 0x36c   :  { %v4213_v7 = vpop.eup %3489  ;;  %v1382_v51 = vmul.f32 1.442695, %v1327_v23  ;;  %v1384_v52 = vmul.f32 1.442695, %v1328_v39  ;;  %v1445_v50 = vsel %vm1207_vm3, %v4211_v6, 0.0 }
 0x36d   :  { %v1285_v56 = vpop.xlane.xlu0 %1284  ;;  %1446 = vadd.xlane.f32.xlu0 %v1445_v50  ;;  %v1448_v1 = vsel %vm1207_vm3, %v4213_v7, 0.0 }
 0x36e   :  { %3503 = vpow2.f32 %v1382_v51  ;;  %v1329_v59 = vsub.f32 %v4086_v48, %v1285_v56  ;;  %1449 = vadd.xlane.f32.xlu1 %v1448_v1 }
 0x36f   :  { %v4220_v40 = vpop.eup %3491  ;;  %3505 = vpow2.f32 %v1384_v52 }
 0x370   :  { %v4222_v2 = vpop.eup %3493  ;;  %v1386_v11 = vmul.f32 1.442695, %v1329_v59  ;;  %v1451_v17 = vsel %vm1207_vm3, %v4220_v40, 0.0 }
 0x371   :  { %1452 = vadd.xlane.f32.xlu0 %v1451_v17  ;;  %v1454_v44 = vsel %vm1207_vm3, %v4222_v2, 0.0 }
 0x372   :  { %3507 = vpow2.f32 %v1386_v11  ;;  %1455 = vadd.xlane.f32.xlu1 %v1454_v44 }
 0x373   :  { %v4228_v58 = vpop.eup %3495 }
 0x374   :  { %v4230_v63 = vpop.eup %3497  ;;  %v1457_v48 = vsel %vm1207_vm3, %v4228_v58, 0.0 }
 0x375   :  { %1458 = vadd.xlane.f32.xlu0 %v1457_v48  ;;  %v1460_v24 = vsel %vm1207_vm3, %v4230_v63, 0.0 }
 0x376   :  { %1461 = vadd.xlane.f32.xlu1 %v1460_v24 }
 0x377   :  { %v4236_v13 = vpop.eup %3499 }
 0x378   :  { %v4238_v15 = vpop.eup %3501  ;;  %v1463_v45 = vsel %vm1207_vm3, %v4236_v13, 0.0 }
 0x379   :  { %1464 = vadd.xlane.f32.xlu0 %v1463_v45  ;;  %v1466_v18 = vsel %vm1207_vm3, %v4238_v15, 0.0 }
 0x37a   :  { %1467 = vadd.xlane.f32.xlu1 %v1466_v18 }
 0x37b   :  { %v4244_v54 = vpop.eup %3503 }
 0x37c   :  { %v4246_v30 = vpop.eup %3505  ;;  %v1469_v28 = vsel %vm1207_vm3, %v4244_v54, 0.0 }
 0x37d   :  { %1470 = vadd.xlane.f32.xlu0 %v1469_v28  ;;  %v1472_v36 = vsel %vm1207_vm3, %v4246_v30, 0.0 }
 0x37e   :  { %1473 = vadd.xlane.f32.xlu1 %v1472_v36 }
 0x37f   :  { %v4252_v33 = vpop.eup %3507 }
 0x380   :  { %v1402_v31 = vpop.xlane.xlu1 %1401  ;;  %v1475_v23 = vsel %vm1207_vm3, %v4252_v33, 0.0 }
 0x381   :  { %3509 = vrcp.f32 %v1402_v31  ;;  %1476 = vadd.xlane.f32.xlu0 %v1475_v23 }
 0x384   :  { %v1405_v39 = vpop.xlane.xlu0 %1404  ;;  %v1288_v51 = vpop.xlane.xlu1 %1287 }
 0x385   :  { %3511 = vrcp.f32 %v1405_v39  ;;  %v1330_v52 = vsub.f32 %v4094_v4, %v1288_v51  ;;  %v3379_v51 = vunpack.i.h.bf16 %v4020_v61 }
 0x387   :  { %v1388_v50 = vmul.f32 1.442695, %v1330_v52  ;;  %v3378_v52 = vunpack.i.l.bf16 %v4020_v61 }
 0x388   :  { %v1291_v56 = vpop.xlane.xlu0 %1290  ;;  %v1294_v1 = vpop.xlane.xlu1 %1293 }
 0x389   :  { %3513 = vpow2.f32 %v1388_v50  ;;  %v1331_v59 = vsub.f32 %v4103_v32, %v1291_v56  ;;  %v1332_v11 = vsub.f32 %v4096_v62, %v1294_v1 }
 0x38b   :  { %v1390_v17 = vmul.f32 1.442695, %v1331_v59  ;;  %v1392_v44 = vmul.f32 1.442695, %v1332_v11 }
 0x38c   :  { %v1297_v48 = vpop.xlane.xlu0 %1296  ;;  %v1408_v24 = vpop.xlane.xlu1 %1407 }
 0x38d   :  { %3515 = vpow2.f32 %v1390_v17  ;;  %v1333_v45 = vsub.f32 %v4105_v37, %v1297_v48 }
 0x38e   :  { %v3510_v18 = vpop.eup %3509  ;;  %3517 = vpow2.f32 %v1392_v44  ;;  %v392_v44 = vpack.c.bf16 %v3379_v51, %v3378_v52 }
 0x38f   :  { %v1394_v28 = vmul.f32 1.442695, %v1333_v45  ;;  %3519 = vrcp.f32 %v1408_v24  ;;  %v1528_v31 = vmul.f32 0.125, %v3510_v18 }
 0x390   :  { %v1411_v4 = vpop.xlane.xlu0 %1410  ;;  %v1300_v36 = vpop.xlane.xlu1 %1299 }
 0x391   :  { %3521 = vpow2.f32 %v1394_v28  ;;  %v1334_v23 = vsub.f32 %v4108_v41, %v1300_v36  ;;  %v1560_v37 = vmul.f32 %v4114_v21, %v1528_v31  ;;  %v3384_v36 = vunpack.i.h.bf16 %v4040_v5 }
 0x392   :  { %v3512_v32 = vpop.eup %3511  ;;  %3523 = vrcp.f32 %v1411_v4  ;;  %v3383_v31 = vunpack.i.l.bf16 %v4040_v5 }
 0x393   :  { %v1529_v62 = vmul.f32 0.125, %v3512_v32  ;;  %v1396_v39 = vmul.f32 1.442695, %v1334_v23 }
 0x394   :  { %v1303_v50 = vpop.xlane.xlu0 %1302  ;;  %v393_v52 = vpack.c.bf16 %v3384_v36, %v3383_v31 }
 0x395   :  { %v1561_v56 = vmul.f32 %v4118_v10, %v1529_v62  ;;  %3525 = vpow2.f32 %v1396_v39  ;;  %v1335_v1 = vsub.f32 %v4111_v60, %v1303_v50 }
 0x396   :  { %v4266_v59 = vpop.eup %3513 }
 0x397   :  { %v1592_v11 = vpack.c.bf16 %v1561_v56, %v1560_v37  ;;  %v1398_v41 = vmul.f32 1.442695, %v1335_v1  ;;  %v1478_v17 = vsel %vm1207_vm3, %v4266_v59, 0.0 }
 0x398   :  { %1479 = vadd.xlane.f32.xlu1 %v1478_v17 }
 0x399   :  { %3527 = vpow2.f32 %v1398_v41  ;;  %3138 = vmatmul.mubr.msk.bf16.vlgmr.msra.gmra.mxu1 %vm1207_vm3, %v1592_v11 }
 0x39a   :  { %v4271_v61 = vpop.eup %3515  ;;  %3148 = vmatpush3.bf16.msra.mxu1 %v392_v44  ;;  %3149 = vmatprep.mubr.msk.bf16.mxu1 %vm3685_vm1, %v3683_v47 }
 0x39b   :  { %v4275_v21 = vpop.eup %3517  ;;  %v1481_v60 = vsel %vm1207_vm3, %v4271_v61, 0.0  ;;  %3159 = vmatprep.subr.bf16.mxu1 %v3683_v47 }
 0x39c   :  { %v3520_v10 = vpop.eup %3519  ;;  %1482 = vadd.xlane.f32.xlu0 %v1481_v60  ;;  %v1484_v48 = vsel %vm1207_vm3, %v4275_v21, 0.0 }
 0x39d   :  { %1485 = vadd.xlane.f32.xlu1 %v1484_v48  ;;  %v1530_v45 = vmul.f32 0.125, %v3520_v10  ;;  %v3389_v48 = vunpack.i.h.bf16 %v4034_v8 }
 0x39e   :  { %v4282_v24 = vpop.eup %3521 }
 0x39f   :  { %v3524_v18 = vpop.eup %3523  ;;  %v1487_v28 = vsel %vm1207_vm3, %v4282_v24, 0.0  ;;  %v1562_v32 = vmul.f32 %v4128_v14, %v1530_v45  ;;  %v4306_v14 = vpop.permute.xlu1 %3431  ;;  %v3388_v45 = vunpack.i.l.bf16 %v4034_v8 }
 0x3a0   :  { %v1531_v4 = vmul.f32 0.125, %v3524_v18  ;;  %1488 = vadd.xlane.f32.xlu0 %v1487_v28 }
 0x3a2   :  { %v4288_v23 = vpop.eup %3525  ;;  %v1563_v62 = vmul.f32 %v4134_v42, %v1531_v4  ;;  %v4308_v42 = vpop.permute.xlu0 %3426 }
 0x3a3   :  { %v1490_v39 = vsel %vm1207_vm3, %v4288_v23, 0.0 }
 0x3a4   :  { %v1593_v51 = vpack.c.bf16 %v1563_v62, %v1562_v32  ;;  %1491 = vadd.xlane.f32.xlu1 %v1490_v39  ;;  %v394_v62 = vpack.c.bf16 %v3389_v48, %v3388_v45  ;;  %v3399_v48 = vunpack.i.h.bf16 %v4050_v16  ;;  %v3398_v45 = vunpack.i.l.bf16 %v4050_v16 }
 0x3a5   :  { %v3404_v16 = vunpack.i.h.bf16 %v4072_v34 }
 0x3a6   :  { %v4294_v50 = vpop.eup %3527  ;;  %3144 = vmatmul.mubr.msk.bf16.vlgmr.msra.gmra.mxu0 %vm1207_vm3, %v1593_v51 }
 0x3a7   :  { %3154 = vmatpush3.bf16.msra.mxu0 %v393_v52  ;;  %v1493_v5 = vsel %vm1207_vm3, %v4294_v50, 0.0  ;;  %3155 = vmatprep.mubr.msk.bf16.mxu0 %vm3685_vm1, %v3683_v47 }
 0x3a8   :  { %1494 = vadd.xlane.f32.xlu0 %v1493_v5  ;;  %3165 = vmatprep.subr.bf16.mxu0 %v3683_v47 }
 0x3b5   :  { %3441 = vrot.lane.b32.xlu1 %v3768_v46, %s3687_s16 }
 0x3be   :  { %3436 = vrot.lane.b32.xlu0 %v3754_v35, %s3687_s16 }
 0x3da   :  { %v1414_v37 = vpop.xlane.xlu1 %1413 }
 0x3db   :  { %3529 = vrcp.f32 %v1414_v37  ;;  %v3393_v37 = vunpack.i.l.bf16 %v4056_v20 }
 0x3de   :  { %v1417_v56 = vpop.xlane.xlu0 %1416 }
 0x3df   :  { %3531 = vrcp.f32 %v1417_v56 }
 0x3e2   :  { %v1420_v1 = vpop.xlane.xlu1 %1419 }
 0x3e3   :  { %3533 = vrcp.f32 %v1420_v1 }
 0x3e6   :  { %v1423_v11 = vpop.xlane.xlu0 %1422 }
 0x3e7   :  { %3535 = vrcp.f32 %v1423_v11  ;;  %v1426_v41 = vpop.xlane.xlu1 %1425 }
 0x3e8   :  { %v3530_v17 = vpop.eup %3529  ;;  %3537 = vrcp.f32 %v1426_v41 }
 0x3e9   :  { %v1532_v46 = vmul.f32 0.125, %v3530_v17 }
 0x3ea   :  { %v1429_v44 = vpop.xlane.xlu0 %1428 }
 0x3eb   :  { %3539 = vrcp.f32 %v1429_v44  ;;  %v1432_v60 = vpop.xlane.xlu1 %1431  ;;  %v1564_v28 = vmul.f32 %v4153_v29, %v1532_v46 }
 0x3ec   :  { %v3532_v35 = vpop.eup %3531  ;;  %3541 = vrcp.f32 %v1432_v60 }
 0x3ed   :  { %v1533_v10 = vmul.f32 0.125, %v3532_v35 }
 0x3ee   :  { %v1435_v18 = vpop.xlane.xlu0 %1434 }
 0x3ef   :  { %v1565_v4 = vmul.f32 %v4159_v53, %v1533_v10  ;;  %3543 = vrcp.f32 %v1435_v18  ;;  %v1438_v36 = vpop.xlane.xlu1 %1437  ;;  %v3394_v53 = vunpack.i.h.bf16 %v4056_v20 }
 0x3f0   :  { %v3534_v31 = vpop.eup %3533  ;;  %3545 = vrcp.f32 %v1438_v36 }
 0x3f1   :  { %v1594_v32 = vpack.c.bf16 %v1565_v4, %v1564_v28  ;;  %v1534_v51 = vmul.f32 0.125, %v3534_v31  ;;  %v395_v10 = vpack.c.bf16 %v3394_v53, %v3393_v37 }
 0x3f2   :  { %v1441_v39 = vpop.xlane.xlu0 %1440 }
 0x3f3   :  { %3547 = vrcp.f32 %v1441_v39  ;;  %v1444_v52 = vpop.xlane.xlu1 %1443  ;;  %3150 = vmatmul.mubr.msk.bf16.vlgmr.msra.gmra.mxu1 %vm1207_vm3, %v1594_v32  ;;  %v1566_v1 = vmul.f32 %v4165_v12, %v1534_v51 }
 0x3f4   :  { %v3536_v5 = vpop.eup %3535  ;;  %3549 = vrcp.f32 %v1444_v52  ;;  %3160 = vmatpush3.bf16.msra.mxu1 %v394_v62  ;;  %3161 = vmatprep.mubr.msk.bf16.mxu1 %vm3685_vm1, %v3683_v47 }
 0x3f5   :  { %v3538_v8 = vpop.eup %3537  ;;  %v1535_v29 = vmul.f32 0.125, %v3536_v5  ;;  %3171 = vmatprep.subr.bf16.mxu1 %v3683_v47 }
 0x3f6   :  { %v1447_v56 = vpop.xlane.xlu0 %1446  ;;  %v1536_v41 = vmul.f32 0.125, %v3538_v8 }
 0x3f7   :  { %v1567_v11 = vmul.f32 %v4171_v26, %v1535_v29  ;;  %3551 = vrcp.f32 %v1447_v56  ;;  %v1450_v17 = vpop.xlane.xlu1 %1449 }
 0x3f8   :  { %v3540_v44 = vpop.eup %3539  ;;  %3553 = vrcp.f32 %v1450_v17  ;;  %v1568_v20 = vmul.f32 %v4173_v0, %v1536_v41  ;;  %v3403_v0 = vunpack.i.l.bf16 %v4072_v34 }
 0x3f9   :  { %v3542_v46 = vpop.eup %3541  ;;  %v1595_v60 = vpack.c.bf16 %v1567_v11, %v1566_v1  ;;  %v1537_v35 = vmul.f32 0.125, %v3540_v44 }
 0x3fa   :  { %v1453_v18 = vpop.xlane.xlu0 %1452  ;;  %v1538_v28 = vmul.f32 0.125, %v3542_v46  ;;  %v397_v37 = vpack.c.bf16 %v3404_v16, %v3403_v0 }
 0x3fb   :  { %v1569_v12 = vmul.f32 %v4181_v43, %v1537_v35  ;;  %3555 = vrcp.f32 %v1453_v18  ;;  %v1456_v26 = vpop.xlane.xlu1 %1455  ;;  %3156 = vmatmul.mubr.msk.bf16.vlgmr.msra.gmra.mxu0 %vm1207_vm3, %v1595_v60  ;;  %v396_v43 = vpack.c.bf16 %v3399_v48, %v3398_v45 }
 0x3fc   :  { %v3544_v4 = vpop.eup %3543  ;;  %3557 = vrcp.f32 %v1456_v26  ;;  %3166 = vmatpush3.bf16.msra.mxu0 %v395_v10  ;;  %3167 = vmatprep.mubr.msk.bf16.mxu0 %vm3685_vm1, %v3683_v47  ;;  %v1570_v39 = vmul.f32 %v4183_v38, %v1538_v28  ;;  %v3409_v38 = vunpack.i.h.bf16 %v4066_v25 }
 0x3fd   :  { %v3546_v36 = vpop.eup %3545  ;;  %v1596_v31 = vpack.c.bf16 %v1569_v12, %v1568_v20  ;;  %v1539_v32 = vmul.f32 0.125, %v3544_v4  ;;  %3177 = vmatprep.subr.bf16.mxu0 %v3683_v47 }
 0x3fe   :  { %v1459_v62 = vpop.xlane.xlu0 %1458  ;;  %v1540_v52 = vmul.f32 0.125, %v3546_v36 }
 0x3ff   :  { %v1571_v51 = vmul.f32 %v4191_v3, %v1539_v32  ;;  %3559 = vrcp.f32 %v1459_v62  ;;  %v1462_v5 = vpop.xlane.xlu1 %1461  ;;  %3162 = vmatmul.mubr.msk.bf16.vlgmr.msra.gmra.mxu1 %vm1207_vm3, %v1596_v31  ;;  %v3408_v3 = vunpack.i.l.bf16 %v4066_v25  ;;  %v3414_v25 = vunpack.i.h.bf16 %v4088_v49 }
 0x400   :  { %v3548_v8 = vpop.eup %3547  ;;  %3561 = vrcp.f32 %v1462_v5  ;;  %3172 = vmatpush3.bf16.msra.mxu1 %v396_v43  ;;  %3173 = vmatprep.mubr.msk.bf16.mxu1 %vm3685_vm1, %v3683_v47  ;;  %v1572_v1 = vmul.f32 %v4193_v9, %v1540_v52  ;;  %v3413_v9 = vunpack.i.l.bf16 %v4088_v49 }
 0x401   :  { %v3550_v29 = vpop.eup %3549  ;;  %v1597_v53 = vpack.c.bf16 %v1571_v51, %v1570_v39  ;;  %v1541_v34 = vmul.f32 0.125, %v3548_v8  ;;  %3183 = vmatprep.subr.bf16.mxu1 %v3683_v47  ;;  %v3424_v51 = vunpack.i.h.bf16 %v4098_v57 }
 0x402   :  { %v1465_v56 = vpop.xlane.xlu0 %1464  ;;  %v1542_v41 = vmul.f32 0.125, %v3550_v29  ;;  %v399_v4 = vpack.c.bf16 %v3414_v25, %v3413_v9 }
 0x403   :  { %v1573_v11 = vmul.f32 %v4201_v27, %v1541_v34  ;;  %3563 = vrcp.f32 %v1465_v56  ;;  %v1468_v17 = vpop.xlane.xlu1 %1467  ;;  %3168 = vmatmul.mubr.msk.bf16.vlgmr.msra.gmra.mxu0 %vm1207_vm3, %v1597_v53  ;;  %v398_v27 = vpack.c.bf16 %v3409_v38, %v3408_v3 }
 0x404   :  { %v3552_v44 = vpop.eup %3551  ;;  %3565 = vrcp.f32 %v1468_v17  ;;  %3178 = vmatpush3.bf16.msra.mxu0 %v397_v37  ;;  %3179 = vmatprep.mubr.msk.bf16.mxu0 %vm3685_vm1, %v3683_v47  ;;  %v1574_v48 = vmul.f32 %v4203_v22, %v1542_v41  ;;  %v3419_v22 = vunpack.i.h.bf16 %v4082_v55  ;;  %v3434_v17 = vunpack.i.h.bf16 %v4306_v14 }
 0x405   :  { %v3554_v46 = vpop.eup %3553  ;;  %v1598_v60 = vpack.c.bf16 %v1573_v11, %v1572_v1  ;;  %v1543_v35 = vmul.f32 0.125, %v3552_v44  ;;  %3189 = vmatprep.subr.bf16.mxu0 %v3683_v47 }
 0x406   :  { %v1471_v10 = vpop.xlane.xlu0 %1470  ;;  %v1544_v18 = vmul.f32 0.125, %v3554_v46 }
 0x407   :  { %v1575_v45 = vmul.f32 %v4211_v6, %v1543_v35  ;;  %3567 = vrcp.f32 %v1471_v10  ;;  %v1474_v20 = vpop.xlane.xlu1 %1473  ;;  %3174 = vmatmul.mubr.msk.bf16.vlgmr.msra.gmra.mxu1 %vm1207_vm3, %v1598_v60  ;;  %v3418_v6 = vunpack.i.l.bf16 %v4082_v55 }
 0x408   :  { %v3556_v12 = vpop.eup %3555  ;;  %3569 = vrcp.f32 %v1474_v20  ;;  %3184 = vmatpush3.bf16.msra.mxu1 %v398_v27  ;;  %3185 = vmatprep.mubr.msk.bf16.mxu1 %vm3685_vm1, %v3683_v47  ;;  %v1576_v31 = vmul.f32 %v4213_v7, %v1544_v18  ;;  %v3423_v7 = vunpack.i.l.bf16 %v4098_v57  ;;  %v3429_v57 = vunpack.i.h.bf16 %v4308_v42 }
 0x409   :  { %v3558_v28 = vpop.eup %3557  ;;  %v1599_v26 = vpack.c.bf16 %v1575_v45, %v1574_v48  ;;  %v1545_v49 = vmul.f32 0.125, %v3556_v12  ;;  %3195 = vmatprep.subr.bf16.mxu1 %v3683_v47  ;;  %v400_v55 = vpack.c.bf16 %v3419_v22, %v3418_v6 }
 0x40a   :  { %v1477_v36 = vpop.xlane.xlu0 %1476  ;;  %v1546_v16 = vmul.f32 0.125, %v3558_v28  ;;  %v401_v37 = vpack.c.bf16 %v3424_v51, %v3423_v7  ;;  %v2328_v7 = vld [vmem:[#allocation7] sm:$0xf] }
 0x40b   :  { %v1577_v32 = vmul.f32 %v4220_v40, %v1545_v49  ;;  %3571 = vrcp.f32 %v1477_v36  ;;  %3180 = vmatmul.mubr.msk.bf16.vlgmr.msra.gmra.mxu0 %vm1207_vm3, %v1599_v26 }
 0x40c   :  { %v3560_v0 = vpop.eup %3559  ;;  %3190 = vmatpush3.bf16.msra.mxu0 %v399_v4  ;;  %3191 = vmatprep.mubr.msk.bf16.mxu0 %vm3685_vm1, %v3683_v47  ;;  %v1578_v40 = vmul.f32 %v4222_v2, %v1546_v16  ;;  %v3428_v2 = vunpack.i.l.bf16 %v4308_v42  ;;  %v3433_v42 = vunpack.i.l.bf16 %v4306_v14 }
 0x40d   :  { %v3562_v43 = vpop.eup %3561  ;;  %v1600_v62 = vpack.c.bf16 %v1577_v32, %v1576_v31  ;;  %v1547_v39 = vmul.f32 0.125, %v3560_v0  ;;  %3201 = vmatprep.subr.bf16.mxu0 %v3683_v47 }
 0x40e   :  { %v1548_v5 = vmul.f32 0.125, %v3562_v43  ;;  %v403_v9 = vpack.c.bf16 %v3434_v17, %v3433_v42 }
 0x40f   :  { %v1579_v52 = vmul.f32 %v4228_v58, %v1547_v39  ;;  %3186 = vmatmul.mubr.msk.bf16.vlgmr.msra.gmra.mxu1 %vm1207_vm3, %v1600_v62 }
 0x410   :  { %v3564_v8 = vpop.eup %3563  ;;  %3196 = vmatpush3.bf16.msra.mxu1 %v400_v55  ;;  %3197 = vmatprep.mubr.msk.bf16.mxu1 %vm3685_vm1, %v3683_v47  ;;  %v1580_v58 = vmul.f32 %v4230_v63, %v1548_v5  ;;  %v402_v63 = vpack.c.bf16 %v3429_v57, %v3428_v2  ;;  %v2344_v5 = vsel %vm2342_vm4, %v2328_v7, 0  ;;  %v2330_v57 = vld [vmem:[#allocation7 + $0x8] sm:$0xf]  ;;  %v2331_v2 = vld [vmem:[#allocation7 + $0xc] sm:$0xf] }
 0x411   :  { %v3566_v29 = vpop.eup %3565  ;;  %v1601_v53 = vpack.c.bf16 %v1579_v52, %v1578_v40  ;;  %v1549_v34 = vmul.f32 0.125, %v3564_v8  ;;  %3207 = vmatprep.subr.bf16.mxu1 %v3683_v47  ;;  %v2329_v8 = vld [vmem:[#allocation7 + $0x4] sm:$0xf]  ;;  %v2460_v17 = vsel %vm2342_vm4, %v2330_v57, 0 }
 0x412   :  { %v1550_v3 = vmul.f32 0.125, %v3566_v29 }
 0x413   :  { %v1581_v38 = vmul.f32 %v4236_v13, %v1549_v34  ;;  %3192 = vmatmul.mubr.msk.bf16.vlgmr.msra.gmra.mxu0 %vm1207_vm3, %v1601_v53 }
 0x414   :  { %v3568_v56 = vpop.eup %3567  ;;  %3202 = vmatpush3.bf16.msra.mxu0 %v401_v37  ;;  %3203 = vmatprep.mubr.msk.bf16.mxu0 %vm3685_vm1, %v3683_v47  ;;  %v1582_v13 = vmul.f32 %v4238_v15, %v1550_v3 }
 0x415   :  { %v3570_v1 = vpop.eup %3569  ;;  %v1602_v11 = vpack.c.bf16 %v1581_v38, %v1580_v58  ;;  %v1551_v41 = vmul.f32 0.125, %v3568_v56  ;;  %3213 = vmatprep.subr.bf16.mxu0 %v3683_v47 }
 0x416   :  { %v1552_v46 = vmul.f32 0.125, %v3570_v1 }
 0x417   :  { %v1583_v44 = vmul.f32 %v4244_v54, %v1551_v41  ;;  %3198 = vmatmul.mubr.msk.bf16.vlgmr.msra.gmra.mxu1 %vm1207_vm3, %v1602_v11 }
 0x418   :  { %v3572_v60 = vpop.eup %3571  ;;  %3208 = vmatpush3.bf16.msra.mxu1 %v402_v63  ;;  %3209 = vmatprep.mubr.msk.bf16.mxu1 %vm3685_vm1, %v3683_v47  ;;  %v1584_v14 = vmul.f32 %v4246_v30, %v1552_v46  ;;  %v2332_v63 = vld [vmem:[#allocation7 + $0x10] sm:$0xf] }
 0x419   :  { %v1603_v35 = vpack.c.bf16 %v1583_v44, %v1582_v13  ;;  %v1553_v25 = vmul.f32 0.125, %v3572_v60  ;;  %3219 = vmatprep.subr.bf16.mxu1 %v3683_v47 }
 0x41b   :  { %v1585_v27 = vmul.f32 %v4252_v33, %v1553_v25  ;;  %3204 = vmatmul.mubr.msk.bf16.vlgmr.msra.gmra.mxu0 %vm1207_vm3, %v1603_v35 }
 0x41c   :  { %3214 = vmatpush3.bf16.msra.mxu0 %v403_v9  ;;  %3215 = vmatprep.mubr.msk.bf16.mxu0 %vm3685_vm1, %v3683_v47 }
 0x41d   :  { %v1604_v15 = vpack.c.bf16 %v1585_v27, %v1584_v14  ;;  %3225 = vmatprep.subr.bf16.mxu0 %v3683_v47 }
 0x41f   :  { %3210 = vmatmul.mubr.msk.bf16.vlgmr.msra.gmra.mxu1 %vm1207_vm3, %v1604_v15 }
 0x420   :  { %3221 = vmatprep.mubr.msk.bf16.mxu1 %vm3685_vm1, %v3683_v47 }
 0x421   :  { %v1480_v54 = vpop.xlane.xlu1 %1479 }
 0x422   :  { %3573 = vrcp.f32 %v1480_v54  ;;  %v2518_v54 = vsel %vm2342_vm4, %v2331_v2, 0 }
 0x425   :  { %v1483_v10 = vpop.xlane.xlu0 %1482 }
 0x426   :  { %3575 = vrcp.f32 %v1483_v10  ;;  %v1486_v30 = vpop.xlane.xlu1 %1485 }
 0x427   :  { %3577 = vrcp.f32 %v1486_v30 }
 0x429   :  { %v1489_v33 = vpop.xlane.xlu0 %1488 }
 0x42a   :  { %3579 = vrcp.f32 %v1489_v33  ;;  %v2333_v33 = vld [vmem:[#allocation7 + $0x14] sm:$0xf] }
 0x42d   :  { %v1492_v48 = vpop.xlane.xlu1 %1491 }
 0x42e   :  { %3581 = vrcp.f32 %v1492_v48 }
 0x42f   :  { %v3574_v45 = vpop.eup %3573 }
 0x430   :  { %v1554_v18 = vmul.f32 0.125, %v3574_v45 }
 0x431   :  { %v1495_v20 = vpop.xlane.xlu0 %1494  ;;  %v3442_v12 = vpop.permute.xlu1 %3441 }
 0x432   :  { %3583 = vrcp.f32 %v1495_v20  ;;  %v1586_v4 = vmul.f32 %v4266_v59, %v1554_v18  ;;  %v3444_v22 = vunpack.i.h.bf16 %v3442_v12  ;;  %v3443_v6 = vunpack.i.l.bf16 %v3442_v12 }
 0x433   :  { %v3576_v28 = vpop.eup %3575 }
 0x434   :  { %v3578_v26 = vpop.eup %3577  ;;  %v1555_v49 = vmul.f32 0.125, %v3576_v28  ;;  %v405_v51 = vpack.c.bf16 %v3444_v22, %v3443_v6 }
 0x435   :  { %v3437_v36 = vpop.permute.xlu0 %3436  ;;  %v1556_v32 = vmul.f32 0.125, %v3578_v26 }
 0x436   :  { %v1587_v31 = vmul.f32 %v4271_v61, %v1555_v49  ;;  %v3439_v16 = vunpack.i.h.bf16 %v3437_v36  ;;  %v3438_v0 = vunpack.i.l.bf16 %v3437_v36  ;;  %v2334_v36 = vld [vmem:[#allocation7 + $0x18] sm:$0xf] }
 0x437   :  { %v3580_v43 = vpop.eup %3579  ;;  %v1588_v40 = vmul.f32 %v4275_v21, %v1556_v32 }
 0x438   :  { %v1605_v62 = vpack.c.bf16 %v1587_v31, %v1586_v4  ;;  %v1557_v39 = vmul.f32 0.125, %v3580_v43  ;;  %v404_v55 = vpack.c.bf16 %v3439_v16, %v3438_v0  ;;  %v2576_v4 = vsel %vm2342_vm4, %v2332_v63, 0 }
 0x43a   :  { %v1589_v52 = vmul.f32 %v4282_v24, %v1557_v39  ;;  %3216 = vmatmul.mubr.msk.bf16.vlgmr.msra.gmra.mxu0 %vm1207_vm3, %v1605_v62  ;;  %3220 = vmatpush3.bf16.msra.mxu1 %v404_v55 }
 0x43b   :  { %v3582_v59 = vpop.eup %3581  ;;  %3226 = vmatpush3.bf16.msra.mxu0 %v405_v51  ;;  %3227 = vmatprep.mubr.msk.bf16.mxu0 %vm3685_vm1, %v3683_v47  ;;  %v2402_v47 = vsel %vm2342_vm4, %v2329_v8, 0  ;;  %v2634_v51 = vsel %vm2342_vm4, %v2333_v33, 0 }
 0x43c   :  { %v1606_v61 = vpack.c.bf16 %v1589_v52, %v1588_v40  ;;  %3279 = vmatprep.subr.msk.bf16.mxu1 %vm2342_vm4, %v2328_v7  ;;  %v1558_v29 = vmul.f32 0.125, %v3582_v59  ;;  %3280 = vmatprep.subr.msk.bf16.mxu0 %vm2342_vm4, %v2329_v8  ;;  %v2335_v52 = vld [vmem:[#allocation7 + $0x1c] sm:$0xf] }
 0x43e   :  { %3222 = vmatmul.mubr.msk.bf16.vlgmr.msra.gmra.mxu1 %vm1207_vm3, %v1606_v61  ;;  %v1590_v53 = vmul.f32 %v4288_v23, %v1558_v29 }
 0x43f   :  { %v3584_v21 = vpop.eup %3583  ;;  %3232 = vmatpush3.bf16.msra.mxu1 %v2344_v5 }
 0x440   :  { %v1559_v24 = vmul.f32 0.125, %v3584_v21  ;;  %3281 = vmatprep.subr.msk.bf16.mxu1 %vm2342_vm4, %v2330_v57 }
 0x442   :  { %v1591_v34 = vmul.f32 %v4294_v50, %v1559_v24 }
 0x444   :  { %v1607_v37 = vpack.c.bf16 %v1591_v34, %v1590_v53  ;;  %v2692_v34 = vsel %vm2342_vm4, %v2334_v36, 0 }
 0x446   :  { %3228 = vmatmul.mubr.msk.bf16.vlgmr.msra.gmra.mxu0 %vm1207_vm3, %v1607_v37 }
 0x447   :  { %3238 = vmatpush3.bf16.msra.mxu0 %v2402_v47 }
 0x448   :  { %3282 = vmatprep.subr.msk.bf16.mxu0 %vm2342_vm4, %v2331_v2 }
 0x459   :  { %v1645_v58 = vpop.f32.mrf.mxu1 }
 0x45b   :  { %v3139_v38 = vpop.f32.mrf.mxu1 }
 0x45d   :  { %v1648_v3 = vpop.f32.mrf.mxu1 }
 0x45e   :  { %v2312_v56 = vpack.c.bf16 %v1648_v3, %v1645_v58 }
 0x45f   :  { %v3140_v1 = vpop.f32.mrf.mxu1 }
 0x460   :  { %3233 = vmatprep.mubr.msk.bf16.mxu1 %vm409_vm2, %v2312_v56 }
 0x466   :  { %v1689_v23 = vpop.f32.mrf.mxu0 }
 0x468   :  { %v3145_v50 = vpop.f32.mrf.mxu0 }
 0x469   :  { %v2750_v50 = vsel %vm2342_vm4, %v2335_v52, 0 }
 0x46a   :  { %v1692_v11 = vpop.f32.mrf.mxu0 }
 0x46b   :  { %v2313_v41 = vpack.c.bf16 %v1692_v11, %v1689_v23 }
 0x46c   :  { %v3146_v42 = vpop.f32.mrf.mxu0 }
 0x46d   :  { %3234 = vmatmul.mubr.msk.bf16.vlgmr.msra.gmra.mxu1 %vm409_vm2, %v2313_v41 }
 0x46e   :  { %3244 = vmatpush3.bf16.msra.mxu1 %v2460_v17 }
 0x46f   :  { %3283 = vmatprep.subr.msk.bf16.mxu1 %vm2342_vm4, %v2332_v63 }
 0x4b3   :  { %v1733_v13 = vpop.f32.mrf.mxu1 }
 0x4b5   :  { %v3151_v44 = vpop.f32.mrf.mxu1 }
 0x4b7   :  { %v1736_v46 = vpop.f32.mrf.mxu1 }
 0x4b8   :  { %v2314_v60 = vpack.c.bf16 %v1736_v46, %v1733_v13 }
 0x4b9   :  { %v3152_v35 = vpop.f32.mrf.mxu1 }
 0x4ba   :  { %3239 = vmatprep.mubr.msk.bf16.mxu0 %vm409_vm2, %v2314_v60 }
 0x4bb   :  { %v1777_v25 = vpop.f32.mrf.mxu0 }
 0x4bd   :  { %v3157_v9 = vpop.f32.mrf.mxu0 }
 0x4bf   :  { %v1780_v14 = vpop.f32.mrf.mxu0  ;;  %v1821_v27 = vpop.f32.mrf.mxu1 }
 0x4c0   :  { %v2315_v15 = vpack.c.bf16 %v1780_v14, %v1777_v25 }
 0x4c1   :  { %v3158_v10 = vpop.f32.mrf.mxu0  ;;  %v3163_v30 = vpop.f32.mrf.mxu1 }
 0x4c2   :  { %3240 = vmatmul.mubr.msk.bf16.vlgmr.msra.gmra.mxu0 %vm409_vm2, %v2315_v15 }
 0x4c3   :  { %v1824_v48 = vpop.f32.mrf.mxu1  ;;  %v1865_v45 = vpop.f32.mrf.mxu0  ;;  %3250 = vmatpush3.bf16.msra.mxu0 %v2518_v54 }
 0x4c4   :  { %v2316_v18 = vpack.c.bf16 %v1824_v48, %v1821_v27  ;;  %3284 = vmatprep.subr.msk.bf16.mxu0 %vm2342_vm4, %v2333_v33 }
 0x4c5   :  { %v3164_v20 = vpop.f32.mrf.mxu1  ;;  %v3169_v12 = vpop.f32.mrf.mxu0 }
 0x4c6   :  { %3245 = vmatprep.mubr.msk.bf16.mxu1 %vm409_vm2, %v2316_v18 }
 0x4c7   :  { %v1868_v28 = vpop.f32.mrf.mxu0  ;;  %v1909_v26 = vpop.f32.mrf.mxu1 }
 0x4c8   :  { %v2317_v49 = vpack.c.bf16 %v1868_v28, %v1865_v45 }
 0x4c9   :  { %v3170_v22 = vpop.f32.mrf.mxu0  ;;  %v3175_v6 = vpop.f32.mrf.mxu1 }
 0x4ca   :  { %3246 = vmatmul.mubr.msk.bf16.vlgmr.msra.gmra.mxu1 %vm409_vm2, %v2317_v49 }
 0x4cb   :  { %v1912_v31 = vpop.f32.mrf.mxu1  ;;  %v1953_v32 = vpop.f32.mrf.mxu0  ;;  %3256 = vmatpush3.bf16.msra.mxu1 %v2576_v4 }
 0x4cc   :  { %v2318_v16 = vpack.c.bf16 %v1912_v31, %v1909_v26  ;;  %3285 = vmatprep.subr.msk.bf16.mxu1 %vm2342_vm4, %v2334_v36 }
 0x4cd   :  { %v3176_v0 = vpop.f32.mrf.mxu1  ;;  %v3181_v43 = vpop.f32.mrf.mxu0 }
 0x4ce   :  { %3251 = vmatprep.mubr.msk.bf16.mxu0 %vm409_vm2, %v2318_v16 }
 0x4cf   :  { %v1956_v62 = vpop.f32.mrf.mxu0  ;;  %v1997_v39 = vpop.f32.mrf.mxu1 }
 0x4d0   :  { %v2319_v55 = vpack.c.bf16 %v1956_v62, %v1953_v32 }
 0x4d1   :  { %v3182_v7 = vpop.f32.mrf.mxu0  ;;  %v3187_v40 = vpop.f32.mrf.mxu1 }
 0x4d2   :  { %3252 = vmatmul.mubr.msk.bf16.vlgmr.msra.gmra.mxu0 %vm409_vm2, %v2319_v55 }
 0x4d3   :  { %v2000_v59 = vpop.f32.mrf.mxu1  ;;  %v2041_v61 = vpop.f32.mrf.mxu0  ;;  %3262 = vmatpush3.bf16.msra.mxu0 %v2634_v51 }
 0x4d4   :  { %v2320_v5 = vpack.c.bf16 %v2000_v59, %v1997_v39  ;;  %3286 = vmatprep.subr.msk.bf16.mxu0 %vm2342_vm4, %v2335_v52 }
 0x4d5   :  { %v3188_v8 = vpop.f32.mrf.mxu1  ;;  %v3193_v29 = vpop.f32.mrf.mxu0 }
 0x4d6   :  { %3257 = vmatprep.mubr.msk.bf16.mxu1 %vm409_vm2, %v2320_v5 }
 0x4d7   :  { %v2044_v21 = vpop.f32.mrf.mxu0  ;;  %v2085_v24 = vpop.f32.mrf.mxu1 }
 0x4d8   :  { %v2321_v53 = vpack.c.bf16 %v2044_v21, %v2041_v61 }
 0x4d9   :  { %v3194_v37 = vpop.f32.mrf.mxu0  ;;  %v3199_v47 = vpop.f32.mrf.mxu1 }
 0x4da   :  { %3258 = vmatmul.mubr.msk.bf16.vlgmr.msra.gmra.mxu1 %vm409_vm2, %v2321_v53  ;;  %v2861_v37 = vld [vmem:[%s4488_s4] sm:$0x1]  ;;  %s3688_s4 = smov [#allocation8]  }
 0x4db   :  { %v2088_v57 = vpop.f32.mrf.mxu1  ;;  %v2129_v2 = vpop.f32.mrf.mxu0  ;;  %3268 = vmatpush3.bf16.msra.mxu1 %v2692_v34  ;;  %s2880_s19 = sshll.u32 %s3688_s4, 4  ;;  %s2881_s19 = int_to_ptr.vmem [resolvable:$true] %s2880_s19 }
 0x4dc   :  { %v2322_v58 = vpack.c.bf16 %v2088_v57, %v2085_v24  ;;  %s3645_s20 = scalar_lea.vmem %s2881_s19, 512  ;;  %p3650_p2 = scmp.lt.s32.totalorder %s2881_s19, %s2881_s19 }
 0x4dd   :  { %v3200_v38 = vpop.f32.mrf.mxu1  ;;  %v3205_v3 = vpop.f32.mrf.mxu0  ;;  %p3646_p1 = scmp.ne.s32.totalorder %s2881_s19, %s3645_s20  ;;  %p3651_p3 = scmp.lt.s32.totalorder %s3645_s20, %s3645_s20 }
 0x4de   :  { %3263 = vmatprep.mubr.msk.bf16.mxu0 %vm409_vm2, %v2322_v58 }
 0x4df   :  { %v2132_v56 = vpop.f32.mrf.mxu0  ;;  %v2173_v1 = vpop.f32.mrf.mxu1  ;;  %p3652_p4 = por %p3651_p3, %p3650_p2 }
 0x4e0   :  { %v2323_v23 = vpack.c.bf16 %v2132_v56, %v2129_v2 }
 0x4e1   :  { %v3206_v11 = vpop.f32.mrf.mxu0  ;;  %v3211_v41 = vpop.f32.mrf.mxu1  ;;  %p3653_p5 = pnand %p3652_p4, %p3646_p1 }
 0x4e2   :  { %3264 = vmatmul.mubr.msk.bf16.vlgmr.msra.gmra.mxu0 %vm409_vm2, %v2323_v23 }
 0x4e3   :  { %v2176_v17 = vpop.f32.mrf.mxu1  ;;  %3274 = vmatpush3.bf16.msra.mxu0 %v2750_v50 }
 0x4e4   :  { %v2324_v42 = vpack.c.bf16 %v2176_v17, %v2173_v1 }
 0x4e5   :  { %v3212_v63 = vpop.f32.mrf.mxu1 }
 0x4e6   :  { %3269 = vmatprep.mubr.msk.bf16.mxu1 %vm409_vm2, %v2324_v42  ;;  %v2862_v42 = vunpack.c.l.bf16 %v2861_v37 }
 0x4fa   :  { %v2217_v13 = vpop.f32.mrf.mxu0 }
 0x4fc   :  { %v3217_v44 = vpop.f32.mrf.mxu0 }
 0x4fe   :  { %v2220_v46 = vpop.f32.mrf.mxu0  ;;  %v2261_v60 = vpop.f32.mrf.mxu1 }
 0x4ff   :  { %v2325_v35 = vpack.c.bf16 %v2220_v46, %v2217_v13 }
 0x500   :  { %v3218_v25 = vpop.f32.mrf.mxu0  ;;  %v3223_v9 = vpop.f32.mrf.mxu1 }
 0x501   :  { %3270 = vmatmul.mubr.msk.bf16.vlgmr.msra.gmra.mxu1 %vm409_vm2, %v2325_v35 }
 0x502   :  { %v2264_v14 = vpop.f32.mrf.mxu1 }
 0x503   :  { %v2326_v27 = vpack.c.bf16 %v2264_v14, %v2261_v60 }
 0x504   :  { %v3224_v15 = vpop.f32.mrf.mxu1 }
 0x505   :  { %3275 = vmatprep.mubr.msk.bf16.mxu0 %vm409_vm2, %v2326_v27 }
 0x506   :  { %v2305_v54 = vpop.f32.mrf.mxu0 }
 0x508   :  { %v3229_v10 = vpop.f32.mrf.mxu0 }
 0x50a   :  { %v2308_v30 = vpop.f32.mrf.mxu0 }
 0x50b   :  { %v2327_v33 = vpack.c.bf16 %v2308_v30, %v2305_v54 }
 0x50c   :  { %v3230_v48 = vpop.f32.mrf.mxu0 }
 0x50d   :  { %3276 = vmatmul.mubr.msk.bf16.vlgmr.msra.gmra.mxu0 %vm409_vm2, %v2327_v33 }
 0x52d   :  { %v3235_v45 = vpop.f32.mrf.mxu1 }
 0x52e   :  { %v2831_v59 = vsel %vm138_vm0, %v3235_v45, 0.0 }
 0x52f   :  { %v2380_v18 = vpop.f32.mrf.mxu1 }
 0x530   :  { %v2801_v21 = vsel %vm138_vm0, %v2380_v18, 0.0 }
 0x531   :  { %v3236_v20 = vpop.f32.mrf.mxu1 }
 0x532   :  { %v2846_v47 = vsel %vm138_vm0, %v3236_v20, 0.0 }
 0x533   :  { %v2383_v12 = vpop.f32.mrf.mxu1 }
 0x534   :  { %v2816_v57 = vsel %vm138_vm0, %v2383_v12, 0.0 }
 0x582   :  { %v3241_v28 = vpop.f32.mrf.mxu0 }
 0x583   :  { %v2832_v40 = vsel %vm138_vm0, %v3241_v28, 0.0 }
 0x584   :  { %v2438_v49 = vpop.f32.mrf.mxu0  ;;  %v2833_v8 = vadd.f32 %v2832_v40, %v2831_v59 }
 0x585   :  { %v2802_v61 = vsel %vm138_vm0, %v2438_v49, 0.0 }
 0x586   :  { %v3242_v22 = vpop.f32.mrf.mxu0  ;;  %v2803_v2 = vadd.f32 %v2802_v61, %v2801_v21 }
 0x587   :  { %v2847_v24 = vsel %vm138_vm0, %v3242_v22, 0.0 }
 0x588   :  { %v2441_v36 = vpop.f32.mrf.mxu0  ;;  %v2848_v50 = vadd.f32 %v2847_v24, %v2846_v47 }
 0x589   :  { %v2817_v3 = vsel %vm138_vm0, %v2441_v36, 0.0 }
 0x58a   :  { %v3247_v26 = vpop.f32.mrf.mxu1  ;;  %v2818_v60 = vadd.f32 %v2817_v3, %v2816_v57 }
 0x58b   :  { %v2834_v5 = vsel %vm138_vm0, %v3247_v26, 0.0  ;;  %v2866_v26 = vrot.slane %v2862_v42, %v3741_v19 }
 0x58c   :  { %v2496_v4 = vpop.f32.mrf.mxu1  ;;  %v2835_v58 = vadd.f32 %v2834_v5, %v2833_v8 }
 0x58d   :  { %v2804_v53 = vsel %vm138_vm0, %v2496_v4, 0.0 }
 0x58e   :  { %v3248_v6 = vpop.f32.mrf.mxu1  ;;  %v2805_v11 = vadd.f32 %v2804_v53, %v2803_v2 }
 0x58f   :  { %v2849_v56 = vsel %vm138_vm0, %v3248_v6, 0.0 }
 0x590   :  { %v2499_v31 = vpop.f32.mrf.mxu1  ;;  %v2850_v35 = vadd.f32 %v2849_v56, %v2848_v50 }
 0x591   :  { %v2819_v63 = vsel %vm138_vm0, %v2499_v31, 0.0 }
 0x592   :  { %v3253_v32 = vpop.f32.mrf.mxu0  ;;  %v2820_v30 = vadd.f32 %v2819_v63, %v2818_v60 }
 0x593   :  { %v2836_v34 = vsel %vm138_vm0, %v3253_v32, 0.0 }
 0x594   :  { %v2554_v0 = vpop.f32.mrf.mxu0  ;;  %v2837_v41 = vadd.f32 %v2836_v34, %v2835_v58 }
 0x595   :  { %v2806_v1 = vsel %vm138_vm0, %v2554_v0, 0.0 }
 0x596   :  { %v3254_v62 = vpop.f32.mrf.mxu0  ;;  %v2807_v25 = vadd.f32 %v2806_v1, %v2805_v11 }
 0x597   :  { %v2851_v13 = vsel %vm138_vm0, %v3254_v62, 0.0 }
 0x598   :  { %v2557_v55 = vpop.f32.mrf.mxu0  ;;  %v2852_v33 = vadd.f32 %v2851_v13, %v2850_v35 }
 0x599   :  { %v2821_v27 = vsel %vm138_vm0, %v2557_v55, 0.0 }
 0x59a   :  { %v3259_v16 = vpop.f32.mrf.mxu1  ;;  %v2822_v49 = vadd.f32 %v2821_v27, %v2820_v30 }
 0x59b   :  { %v2838_v23 = vsel %vm138_vm0, %v3259_v16, 0.0 }
 0x59c   :  { %v2612_v43 = vpop.f32.mrf.mxu1  ;;  %v2839_v9 = vadd.f32 %v2838_v23, %v2837_v41 }
 0x59d   :  { %v2808_v44 = vsel %vm138_vm0, %v2612_v43, 0.0 }
 0x59e   :  { %v3260_v39 = vpop.f32.mrf.mxu1  ;;  %v2809_v48 = vadd.f32 %v2808_v44, %v2807_v25 }
 0x59f   :  { %v2853_v15 = vsel %vm138_vm0, %v3260_v39, 0.0 }
 0x5a0   :  { %v2615_v51 = vpop.f32.mrf.mxu1  ;;  %v2854_v4 = vadd.f32 %v2853_v15, %v2852_v33 }
 0x5a1   :  { %v2823_v20 = vsel %vm138_vm0, %v2615_v51, 0.0 }
 0x5a2   :  { %v3265_v7 = vpop.f32.mrf.mxu0  ;;  %v2824_v43 = vadd.f32 %v2823_v20, %v2822_v49 }
 0x5a3   :  { %v2840_v46 = vsel %vm138_vm0, %v3265_v7, 0.0 }
 0x5a4   :  { %v2670_v29 = vpop.f32.mrf.mxu0  ;;  %v2841_v45 = vadd.f32 %v2840_v46, %v2839_v9 }
 0x5a5   :  { %v2810_v54 = vsel %vm138_vm0, %v2670_v29, 0.0 }
 0x5a6   :  { %v3266_v17 = vpop.f32.mrf.mxu0  ;;  %v2811_v22 = vadd.f32 %v2810_v54, %v2809_v48 }
 0x5a7   :  { %v2855_v12 = vsel %vm138_vm0, %v3266_v17, 0.0 }
 0x5a8   :  { %v2673_v18 = vpop.f32.mrf.mxu0  ;;  %v2856_v62 = vadd.f32 %v2855_v12, %v2854_v4 }
 0x5a9   :  { %v2825_v32 = vsel %vm138_vm0, %v2673_v18, 0.0 }
 0x5aa   :  { %v2826_v40 = vadd.f32 %v2825_v32, %v2824_v43 }
 0x5c1   :  { %v3271_v52 = vpop.f32.mrf.mxu1 }
 0x5c2   :  { %v2842_v10 = vsel %vm138_vm0, %v3271_v52, 0.0 }
 0x5c3   :  { %v2728_v38 = vpop.f32.mrf.mxu1  ;;  %v2843_v6 = vadd.f32 %v2842_v10, %v2841_v45 }
 0x5c4   :  { %v2812_v28 = vsel %vm138_vm0, %v2728_v38, 0.0 }
 0x5c5   :  { %v3272_v14 = vpop.f32.mrf.mxu1  ;;  %v2813_v39 = vadd.f32 %v2812_v28, %v2811_v22 }
 0x5c6   :  { %v2857_v16 = vsel %vm138_vm0, %v3272_v14, 0.0 }
 0x5c7   :  { %v2731_v36 = vpop.f32.mrf.mxu1  ;;  %v2858_v52 = vadd.f32 %v2857_v16, %v2856_v62 }
 0x5c8   :  { %v2827_v7 = vsel %vm138_vm0, %v2731_v36, 0.0 }
 0x5c9   :  { %v2828_v29 = vadd.f32 %v2827_v7, %v2826_v40 }
 0x5cd   :  { %v3277_v31 = vpop.f32.mrf.mxu0 }
 0x5ce   :  { %v2844_v0 = vsel %vm138_vm0, %v3277_v31, 0.0 }
 0x5cf   :  { %v2845_v55 = vadd.f32 %v2844_v0, %v2843_v6  ;;  %v2786_v51 = vpop.f32.mrf.mxu0 }
 0x5d0   :  { %v2814_v19 = vsel %vm138_vm0, %v2786_v51, 0.0 }
 0x5d1   :  { %v2869_v59 = vadd.f32 %v2866_v26, %v2845_v55  ;;  %v2815_v61 = vadd.f32 %v2814_v19, %v2813_v39  ;;  %v3278_v5 = vpop.f32.mrf.mxu0 }
 0x5d2   :  { %v2859_v8 = vsel %vm138_vm0, %v3278_v5, 0.0 }
 0x5d3   :  { %2873 = vst.msk [vmem:[#allocation8 + $0x10] sm:$0xff] %vm138_vm0, %v2869_v59  ;;  %v2867_v21 = vadd.f32 %v2866_v26, %v2815_v61  ;;  %v2860_v24 = vadd.f32 %v2859_v8, %v2858_v52  ;;  %v2789_v53 = vpop.f32.mrf.mxu0 }
 0x5d4   :  { %v2829_v34 = vsel %vm138_vm0, %v2789_v53, 0.0 }
 0x5d5   :  { %2871 = vst.msk [vmem:[#allocation8] sm:$0xff] %vm138_vm0, %v2867_v21  ;;  %v2870_v37 = vadd.f32 %v2866_v26, %v2860_v24  ;;  %v2830_v47 = vadd.f32 %v2829_v34, %v2828_v29 }
 0x5d7   :  { %2874 = vst.msk [vmem:[#allocation8 + $0x18] sm:$0xff] %vm138_vm0, %v2870_v37  ;;  %v2868_v57 = vadd.f32 %v2866_v26, %v2830_v47 }
 0x5d9   :  { %2872 = vst.msk [vmem:[#allocation8 + $0x8] sm:$0xff] %vm138_vm0, %v2868_v57 }
 0x5da   :  { %3656 = shalt.err (!%p3653_p5)
}
 0x5db   :  { %2886 = dma.vmem_to_hbm [thread:$0]  %s2881_s19, 512, %s4489_s5, [#allocation4], %s3673_s23, %s3673_s23, %s3674_s24  }
 0x5dc   :  { %3669 = dma.done.wait [#allocation4], 512  }
 0x5dd   :  { %3670 = vsyncadd [#allocation4], 4294966784 }
 0x5de   :  { %2890 = vsyncpa [#allocation3], 1 }
 0x5df   :  { %2891 = vsyncpa [#allocation6], 1 }
 0x5e0   :  { %2892 = vsyncpa [#allocation4], 1 }

</bundles_post_ra>
